<compile_context>
chip_gen: v6e
topology: v6e:2x2x1
jax: 0.10.0
libtpu: 0.0.40
codegen_flags: <defaults>
</compile_context>

<pallas_src>
import math
import functools

import jax
import jax.numpy as jnp
import numpy as np
from jax import lax
from jax.experimental import pallas as pl
from jax.experimental.pallas import tpu as pltpu

EPS = 1e-6
LANE = 128


def _rms_norm(x, eps=EPS):
    # TODO(synk): archibox RMSNorm exact eps / affine unknown; assume gain=1, eps=1e-6.
    return x * lax.rsqrt(jnp.mean(jnp.square(x), axis=-1, keepdims=True) + eps)


# ------------------------------ fused kernel --------------------------------

def fused_vit_kernel(patch_ref, pos_ref, wpatch_ref, wqkv_ref, wo_ref, osc_ref,
                     w1_ref, w2_ref, msc_ref, wout_ref,
                     out_ref, x_sc, *, n_heads, head_dim, seq_len, tile_n):
    d = pl.program_id(1)                      # depth (arbitrary / sequential) axis
    hd = head_dim
    D = n_heads * hd
    L = seq_len
    TN = tile_n
    TL = TN * L

    # ---- first depth step: patchify + additive positional embedding --------
    @pl.when(d == 0)
    def _():
        p = patch_ref[...].reshape(TL, patch_ref.shape[-1])                  # (TL, P) f32
        x0 = jnp.dot(p, wpatch_ref[...], preferred_element_type=jnp.float32)  # (TL, D)
        x_sc[...] = (x0.reshape(TN, L, D) + pos_ref[...][None]).reshape(TL, D)

    x = x_sc[...]                                                            # (TL, D) f32

    # ---- EncoderSelfAttention (rotary=None path) ----------------------------
    xn = _rms_norm(x).astype(jnp.bfloat16)                                   # in_norm
    # ONE fused lane-dense QKV matmul: (TL, D) @ (D, 3D)
    qkv = jnp.dot(xn, wqkv_ref[0], preferred_element_type=jnp.float32)       # (TL, 3D) f32

    inv_sqrt_hd = 1.0 / math.sqrt(hd)
    head_outs = []
    # Per-head attention with batch as the leading dim (scores (TN, L, L) per head).
    # Note: for large n_heads this unrolled loop should become a head-batched einsum.
    for i in range(n_heads):
        qi = _rms_norm(qkv[:, i * hd:(i + 1) * hd])                          # qk_norm (f32)
        ki = _rms_norm(qkv[:, D + i * hd:D + (i + 1) * hd])
        vi = qkv[:, 2 * D + i * hd:2 * D + (i + 1) * hd]
        qi = qi.reshape(TN, L, hd).astype(jnp.bfloat16)
        ki = ki.reshape(TN, L, hd).astype(jnp.bfloat16)
        vi = vi.reshape(TN, L, hd).astype(jnp.bfloat16)

        s = jnp.einsum('nqd,nkd->nqk', qi, ki,
                       preferred_element_type=jnp.float32) * inv_sqrt_hd     # (TN, L, L) f32
        s = s - jnp.max(s, axis=-1, keepdims=True)
        pr = jnp.exp(s)
        pr = pr * pl.reciprocal(jnp.sum(pr, axis=-1, keepdims=True), approx=True)
        ai = jnp.einsum('nqk,nkd->nqd', pr.astype(jnp.bfloat16), vi,
                        preferred_element_type=jnp.float32)                  # (TN, L, hd)
        head_outs.append(ai.reshape(TL, hd))

    a = jnp.concatenate(head_outs, axis=-1)                                  # (TL, D) = (.., h*hd)
    # ONE fused output projection: (TL, D) @ (D, D)
    o = jnp.dot(a.astype(jnp.bfloat16), wo_ref[0], preferred_element_type=jnp.float32)
    x = x + o * osc_ref[0]                                                   # residual + o_proj scale

    # ---- MLPBlock ------------------------------------------------------------
    # TODO(synk): exact MLPBlock definition not shown; assumed
    #             x + scale * W2(relu(W1(rmsnorm(x)))^2)
    xn = _rms_norm(x).astype(jnp.bfloat16)
    h1 = jnp.dot(xn, w1_ref[0], preferred_element_type=jnp.float32)
    h1 = jnp.square(jnp.maximum(h1, 0.0)).astype(jnp.bfloat16)
    x = x + jnp.dot(h1, w2_ref[0], preferred_element_type=jnp.float32) * msc_ref[0]

    x_sc[...] = x

    # ---- last depth step: mean pooling + Output head --------------------------
    # TODO(synk): Output(dim, n_classes) assumed to be RMSNorm followed by a linear.
    @pl.when(d == pl.num_programs(1) - 1)
    def _():
        pooled = jnp.mean(x.reshape(TN, L, D), axis=1)                       # (TN, D)
        pn = _rms_norm(pooled)
        out_ref[...] = jnp.dot(pn, wout_ref[...],
                               preferred_element_type=jnp.float32).astype(out_ref.dtype)


# --------------------------- host-side preparation ---------------------------

def _patchify_rearrange(images_NCHW, patch_size):
    # 'N C (nh ph) (nw pw) -> N (nh nw) (ph pw C)'
    N, C, H, W = images_NCHW.shape
    ps = patch_size
    nh, nw = H // ps, W // ps
    x = images_NCHW.reshape(N, C, nh, ps, nw, ps)
    x = x.transpose(0, 2, 4, 3, 5, 1)                       # N nh nw ph pw C
    return x.reshape(N, nh * nw, ps * ps * C)


def _prep_fused_inputs(patches_NLP, params, *, n_heads, head_dim):
    """Pre-transpose / stack all weights on the host so the kernel never transposes."""
    N, L, P = patches_NLP.shape
    D = n_heads * head_dim
    M = params["blocks"][0]["w1"].shape[0]
    C = params["w_out"].shape[0]
    C_pad = ((C + LANE - 1) // LANE) * LANE

    patches = patches_NLP.astype(jnp.float32)                                  # (N, L, P)
    pos = params["pos_emb"].astype(jnp.float32)                                # (L, D)
    w_patch_T = params["w_patch"].T.astype(jnp.float32)                        # (P, D)

    blocks = params["blocks"]
    # torch layout: wqkv rows are output features [q(h*hd+j); k; v]; fused form is x @ W.T.
    wqkv = jnp.stack([b["wqkv"].T for b in blocks]).astype(jnp.bfloat16)       # (depth, D, 3D)
    wo = jnp.stack([b["wo"].T for b in blocks]).astype(jnp.bfloat16)           # (depth, D, D)
    o_scale = jnp.stack([b["o_scale"] for b in blocks]).astype(jnp.float32)    # (depth, 1, D)
    w1_T = jnp.stack([b["w1"].T for b in blocks]).astype(jnp.bfloat16)         # (depth, D, M)
    w2_T = jnp.stack([b["w2"].T for b in blocks]).astype(jnp.bfloat16)         # (depth, M, D)
    mlp_scale = jnp.stack([b["mlp_scale"] for b in blocks]).astype(jnp.float32)  # (depth, 1, D)

    w_out_pad = jnp.zeros((D, C_pad), jnp.float32).at[:, :C].set(params["w_out"].T)

    return dict(patches=patches, pos=pos, w_patch=w_patch_T,
                wqkv=wqkv, wo=wo, o_scale=o_scale, w1=w1_T, w2=w2_T,
                mlp_scale=mlp_scale, w_out=w_out_pad,
                dims=(N, L, P, D, M, C, C_pad))


def vit_forward(images_NCHW, params, *, patch_size, n_heads, head_dim, depth):
    patches = _patchify_rearrange(images_NCHW, patch_size)
    inp = _prep_fused_inputs(patches, params, n_heads=n_heads, head_dim=head_dim)
    N, L, P, D, M, C, C_pad = inp["dims"]

    # One batch tile at this size; shrink TN at larger batch to shard the "parallel" axis
    # across TensorCores (v7x) and to bound the resident (TN*L, D) activation scratch.
    TN = N
    n_tiles = N // TN

    kern = functools.partial(fused_vit_kernel, n_heads=n_heads, head_dim=head_dim,
                             seq_len=L, tile_n=TN)

    logits_pad = pl.pallas_call(
        kern,
        out_shape=jax.ShapeDtypeStruct((N, C_pad), jnp.float32),
        grid_spec=pltpu.PrefetchScalarGridSpec(
            num_scalar_prefetch=0,
            grid=(n_tiles, depth),
            in_specs=[
                pl.BlockSpec((TN, L, P), lambda b, d: (b, 0, 0)),             # patches
                pl.BlockSpec((L, D), lambda b, d: (0, 0)),                    # pos emb (L, D)
                pl.BlockSpec((P, D), lambda b, d: (0, 0)),                    # patchify weight
                pl.BlockSpec((1, D, 3 * D), lambda b, d: (d, 0, 0)),          # fused qkv (per layer, bf16)
                pl.BlockSpec((1, D, D), lambda b, d: (d, 0, 0)),              # o_proj (bf16)
                pl.BlockSpec((1, 1, D), lambda b, d: (d, 0, 0)),              # o_proj scale
                pl.BlockSpec((1, D, M), lambda b, d: (d, 0, 0)),              # mlp w1 (bf16)
                pl.BlockSpec((1, M, D), lambda b, d: (d, 0, 0)),              # mlp w2 (bf16)
                pl.BlockSpec((1, 1, D), lambda b, d: (d, 0, 0)),              # mlp scale
                pl.BlockSpec((D, C_pad), lambda b, d: (0, 0)),                # output head (padded)
            ],
            out_specs=pl.BlockSpec((TN, C_pad), lambda b, d: (b, 0)),
            scratch_shapes=[pltpu.VMEM((TN * L, D), jnp.float32)],            # resident activation
        ),
        compiler_params=pltpu.CompilerParams(
            dimension_semantics=("parallel", "arbitrary"),
            # Explicit scoped-VMEM budget: above v5e's 16 MiB default, below v7x's 64 MiB physical.
            vmem_limit_bytes=48 * 1024 * 1024,
        ),
    )(inp["patches"], inp["pos"], inp["w_patch"], inp["wqkv"], inp["wo"],
      inp["o_scale"], inp["w1"], inp["w2"], inp["mlp_scale"], inp["w_out"])

    return logits_pad[:, :C]


# --------------------------- pure-JAX reference -----------------------------

def vit_forward_ref(images_NCHW, params, *, patch_size, n_heads, head_dim, depth):
    D = n_heads * head_dim
    N = images_NCHW.shape[0]
    x = _patchify_rearrange(images_NCHW, patch_size)
    x = x @ params["w_patch"].T + params["pos_emb"][None]
    for d in range(depth):
        b = params["blocks"][d]
        xn = _rms_norm(x)
        qkv = xn @ b["wqkv"].T
        q, k, v = qkv[..., :D], qkv[..., D:2 * D], qkv[..., 2 * D:]
        qh = _rms_norm(q.reshape(N, -1, n_heads, head_dim))
        kh = _rms_norm(k.reshape(N, -1, n_heads, head_dim))
        vh = v.reshape(N, -1, n_heads, head_dim)
        s = jnp.einsum("nqhd,nkhd->nhqk", qh, kh) / math.sqrt(head_dim)
        p = jax.nn.softmax(s, axis=-1)
        a = jnp.einsum("nhqk,nkhd->nqhd", p, vh).reshape(N, -1, D)
        x = x + (a @ b["wo"].T) * b["o_scale"]
        h = jnp.square(jnp.maximum(_rms_norm(x) @ b["w1"].T, 0.0))
        x = x + (h @ b["w2"].T) * b["mlp_scale"]
    pooled = _rms_norm(x.mean(axis=1))
    return pooled @ params["w_out"].T


# ------------------------------- params -------------------------------------

def init_params(key, *, patch_size, dim, mlp_dim, head_dim, depth, n_classes, n_patches):
    P = patch_size * patch_size * 3
    keys = jax.random.split(key, 3 + depth * 4)
    params = {
        "w_patch": jax.random.normal(keys[0], (dim, P), jnp.float32) / math.sqrt(P),
        "pos_emb": 0.02 * jax.random.normal(keys[1], (n_patches, dim), jnp.float32),
        "w_out": jax.random.normal(keys[2], (n_classes, dim), jnp.float32) / math.sqrt(dim),
        "blocks": [],
    }
    ki = 3
    for _ in range(depth):
        params["blocks"].append({
            # torch: nn.Parameter(torch.randn(3, dim, dim) / sqrt(dim) / 2), flattened to (3*dim, dim)
            "wqkv": jax.random.normal(keys[ki], (3 * dim, dim), jnp.float32) / math.sqrt(dim) / 2,
            "wo": jax.random.normal(keys[ki + 1], (dim, dim), jnp.float32) / math.sqrt(dim),
            # o_proj/FusedLinear(scale=True, zero_init=True): zero at init in torch;
            # small nonzero here so the kernel paths are exercised.
            "o_scale": jnp.full((1, dim), 0.1, jnp.float32),
            "w1": jax.random.normal(keys[ki + 2], (mlp_dim, dim), jnp.float32) / math.sqrt(dim),
            "w2": jax.random.normal(keys[ki + 3], (dim, mlp_dim), jnp.float32) / math.sqrt(mlp_dim),
            "mlp_scale": jnp.full((1, dim), 0.1, jnp.float32),
        })
        ki += 4
    return params


# --------------------------------- main --------------------------------------

if __name__ == "__main__":
    image_size = (16, 16)
    patch_size = 4
    dim = 32
    mlp_dim = 64
    head_dim = 16
    depth = 2
    n_classes = 10
    N = 2

    n_heads = dim // head_dim
    nh, nw = image_size[0] // patch_size, image_size[1] // patch_size

    key = jax.random.PRNGKey(0)
    k_img, k_par = jax.random.split(key)
    images = jax.random.normal(k_img, (N, 3, image_size[0], image_size[1]), jnp.float32)
    params = init_params(k_par, patch_size=patch_size, dim=dim, mlp_dim=mlp_dim,
                         head_dim=head_dim, depth=depth, n_classes=n_classes,
                         n_patches=nh * nw)

    logits = vit_forward(images, params, patch_size=patch_size,
                         n_heads=n_heads, head_dim=head_dim, depth=depth)
    logits = jax.block_until_ready(logits)

    ref = vit_forward_ref(images, params, patch_size=patch_size,
                          n_heads=n_heads, head_dim=head_dim, depth=depth)
    np.testing.assert_allclose(np.asarray(logits), np.asarray(ref), rtol=5e-2, atol=5e-2)
    assert logits.shape == (N, n_classes)

    print("KERNEL_OK")
</pallas_src>

<mosaic_0001>
module attributes {stable_mosaic.version = 11 : i64} {
  func.func @fused_vit_kernel(%arg0: i32, %arg1: i32, %arg2: memref<2x16x48xf32, #tpu.memory_space<vmem>>, %arg3: memref<16x32xf32, #tpu.memory_space<vmem>>, %arg4: memref<48x32xf32, #tpu.memory_space<vmem>>, %arg5: memref<1x32x96xbf16, #tpu.memory_space<vmem>>, %arg6: memref<1x32x32xbf16, #tpu.memory_space<vmem>>, %arg7: memref<1x1x32xf32, #tpu.memory_space<vmem>>, %arg8: memref<1x32x64xbf16, #tpu.memory_space<vmem>>, %arg9: memref<1x64x32xbf16, #tpu.memory_space<vmem>>, %arg10: memref<1x1x32xf32, #tpu.memory_space<vmem>>, %arg11: memref<32x128xf32, #tpu.memory_space<vmem>>, %arg12: memref<2x128xf32, #tpu.memory_space<vmem>>, %arg13: memref<32x32xf32, #tpu.memory_space<vmem>>) attributes {dimension_semantics = [#tpu.dimension_semantics<parallel>, #tpu.dimension_semantics<arbitrary>], iteration_bounds = array<i64: 1, 2>, scalar_prefetch = 0 : i64, scratch_operands = 1 : i64, tpu.core_type = #tpu.core_type<tc>, window_params = [{transform_indices = @transform_0, window_bounds = array<i64: 2, 16, 48>}, {pipeline_mode = #tpu.pipeline_mode<synchronous>, transform_indices = @transform_1, window_bounds = array<i64: 16, 32>}, {pipeline_mode = #tpu.pipeline_mode<synchronous>, transform_indices = @transform_2, window_bounds = array<i64: 48, 32>}, {transform_indices = @transform_3, window_bounds = array<i64: 1, 32, 96>}, {transform_indices = @transform_4, window_bounds = array<i64: 1, 32, 32>}, {transform_indices = @transform_5, window_bounds = array<i64: 1, 1, 32>}, {transform_indices = @transform_6, window_bounds = array<i64: 1, 32, 64>}, {transform_indices = @transform_7, window_bounds = array<i64: 1, 64, 32>}, {transform_indices = @transform_8, window_bounds = array<i64: 1, 1, 32>}, {pipeline_mode = #tpu.pipeline_mode<synchronous>, transform_indices = @transform_9, window_bounds = array<i64: 32, 128>}, {transform_indices = @transform_10, window_bounds = array<i64: 2, 128>}]} {
    %c0_i32 = arith.constant 0 : i32
    %0 = arith.cmpi eq, %arg1, %c0_i32 : i32
    %1 = arith.extui %0 : i1 to i32
    %c0_i32_0 = arith.constant 0 : i32
    %2 = arith.cmpi ne, %1, %c0_i32_0 : i32
    scf.if %2 {
      %c0_55 = arith.constant 0 : index
      %c0_56 = arith.constant 0 : index
      %c0_57 = arith.constant 0 : index
      %148 = vector.load %arg2[%c0_55, %c0_56, %c0_57] : memref<2x16x48xf32, #tpu.memory_space<vmem>>, vector<2x16x48xf32>
      %149 = vector.shape_cast %148 : vector<2x16x48xf32> to vector<32x48xf32>
      %c0_58 = arith.constant 0 : index
      %c0_59 = arith.constant 0 : index
      %150 = vector.load %arg4[%c0_58, %c0_59] : memref<48x32xf32, #tpu.memory_space<vmem>>, vector<48x32xf32>
      %cst_60 = arith.constant dense<0.000000e+00> : vector<32x32xf32>
      %151 = tpu.matmul %149, %150, %cst_60 {dimension_numbers = #tpu.dot_dimension_numbers<[1], [0], [0], [1], [0, 0, 1, 1], [], []>} : vector<32x48xf32>, vector<48x32xf32>, vector<32x32xf32> -> vector<32x32xf32>
      %152 = vector.shape_cast %151 : vector<32x32xf32> to vector<2x16x32xf32>
      %c0_61 = arith.constant 0 : index
      %c0_62 = arith.constant 0 : index
      %153 = vector.load %arg3[%c0_61, %c0_62] : memref<16x32xf32, #tpu.memory_space<vmem>>, vector<16x32xf32>
      %154 = vector.shape_cast %153 : vector<16x32xf32> to vector<1x16x32xf32>
      %155 = vector.broadcast %154 : vector<1x16x32xf32> to vector<2x16x32xf32>
      %156 = arith.addf %152, %155 : vector<2x16x32xf32>
      %157 = vector.shape_cast %156 : vector<2x16x32xf32> to vector<32x32xf32>
      %c0_63 = arith.constant 0 : index
      %c0_64 = arith.constant 0 : index
      %158 = vector.load %arg13[%c0_63, %c0_64] : memref<32x32xf32, #tpu.memory_space<vmem>>, vector<32x32xf32>
      tpu.vector_store %arg13[%c0_63, %c0_64], %157 {strides = array<i32>} : memref<32x32xf32, #tpu.memory_space<vmem>>, vector<32x32xf32>,
    } else {
    }
    %c0 = arith.constant 0 : index
    %c0_1 = arith.constant 0 : index
    %3 = vector.load %arg13[%c0, %c0_1] : memref<32x32xf32, #tpu.memory_space<vmem>>, vector<32x32xf32>
    %4 = arith.mulf %3, %3 : vector<32x32xf32>
    %cst = arith.constant dense<0.000000e+00> : vector<32xf32>
    %5 = vector.multi_reduction <add>, %4, %cst [1] : vector<32x32xf32> to vector<32xf32>
    %6 = vector.shape_cast %5 : vector<32xf32> to vector<32x1xf32>
    %cst_2 = arith.constant 3.200000e+01 : f32
    %7 = vector.broadcast %cst_2 : f32 to vector<32x1xf32>
    %8 = arith.divf %6, %7 : vector<32x1xf32>
    %cst_3 = arith.constant 9.99999997E-7 : f32
    %9 = vector.broadcast %cst_3 : f32 to vector<32x1xf32>
    %10 = arith.addf %8, %9 : vector<32x1xf32>
    %11 = math.rsqrt %10 : vector<32x1xf32>
    %12 = vector.broadcast %11 : vector<32x1xf32> to vector<32x32xf32>
    %13 = arith.mulf %3, %12 : vector<32x32xf32>
    %14 = arith.truncf %13 : vector<32x32xf32> to vector<32x32xbf16>
    %c0_4 = arith.constant 0 : index
    %c0_5 = arith.constant 0 : index
    %c0_6 = arith.constant 0 : index
    %15 = vector.load %arg5[%c0_4, %c0_5, %c0_6] : memref<1x32x96xbf16, #tpu.memory_space<vmem>>, vector<1x32x96xbf16>
    %16 = vector.shape_cast %15 : vector<1x32x96xbf16> to vector<32x96xbf16>
    %cst_7 = arith.constant dense<0.000000e+00> : vector<32x96xf32>
    %17 = tpu.matmul %14, %16, %cst_7 {dimension_numbers = #tpu.dot_dimension_numbers<[1], [0], [0], [1], [0, 0, 1, 1], [], []>} : vector<32x32xbf16>, vector<32x96xbf16>, vector<32x96xf32> -> vector<32x96xf32>
    %18 = vector.extract_strided_slice %17 {offsets = [0, 0], sizes = [32, 16], strides = [1, 1]} : vector<32x96xf32> to vector<32x16xf32>
    %19 = arith.mulf %18, %18 : vector<32x16xf32>
    %cst_8 = arith.constant dense<0.000000e+00> : vector<32xf32>
    %20 = vector.multi_reduction <add>, %19, %cst_8 [1] : vector<32x16xf32> to vector<32xf32>
    %21 = vector.shape_cast %20 : vector<32xf32> to vector<32x1xf32>
    %cst_9 = arith.constant 1.600000e+01 : f32
    %22 = vector.broadcast %cst_9 : f32 to vector<32x1xf32>
    %23 = arith.divf %21, %22 : vector<32x1xf32>
    %cst_10 = arith.constant 9.99999997E-7 : f32
    %24 = vector.broadcast %cst_10 : f32 to vector<32x1xf32>
    %25 = arith.addf %23, %24 : vector<32x1xf32>
    %26 = math.rsqrt %25 : vector<32x1xf32>
    %27 = vector.broadcast %26 : vector<32x1xf32> to vector<32x16xf32>
    %28 = arith.mulf %18, %27 : vector<32x16xf32>
    %29 = vector.extract_strided_slice %17 {offsets = [0, 32], sizes = [32, 16], strides = [1, 1]} : vector<32x96xf32> to vector<32x16xf32>
    %30 = arith.mulf %29, %29 : vector<32x16xf32>
    %cst_11 = arith.constant dense<0.000000e+00> : vector<32xf32>
    %31 = vector.multi_reduction <add>, %30, %cst_11 [1] : vector<32x16xf32> to vector<32xf32>
    %32 = vector.shape_cast %31 : vector<32xf32> to vector<32x1xf32>
    %cst_12 = arith.constant 1.600000e+01 : f32
    %33 = vector.broadcast %cst_12 : f32 to vector<32x1xf32>
    %34 = arith.divf %32, %33 : vector<32x1xf32>
    %cst_13 = arith.constant 9.99999997E-7 : f32
    %35 = vector.broadcast %cst_13 : f32 to vector<32x1xf32>
    %36 = arith.addf %34, %35 : vector<32x1xf32>
    %37 = math.rsqrt %36 : vector<32x1xf32>
    %38 = vector.broadcast %37 : vector<32x1xf32> to vector<32x16xf32>
    %39 = arith.mulf %29, %38 : vector<32x16xf32>
    %40 = vector.extract_strided_slice %17 {offsets = [0, 64], sizes = [32, 16], strides = [1, 1]} : vector<32x96xf32> to vector<32x16xf32>
    %41 = vector.shape_cast %28 : vector<32x16xf32> to vector<2x16x16xf32>
    %42 = arith.truncf %41 : vector<2x16x16xf32> to vector<2x16x16xbf16>
    %43 = vector.shape_cast %39 : vector<32x16xf32> to vector<2x16x16xf32>
    %44 = arith.truncf %43 : vector<2x16x16xf32> to vector<2x16x16xbf16>
    %45 = vector.shape_cast %40 : vector<32x16xf32> to vector<2x16x16xf32>
    %46 = arith.truncf %45 : vector<2x16x16xf32> to vector<2x16x16xbf16>
    "tpu.trace_start"() <{level = 10 : i32, message = "nqd,nkd->nqk"}> : () -> ()
    %cst_14 = arith.constant dense<0.000000e+00> : vector<2x16x16xf32>
    %47 = tpu.matmul %42, %44, %cst_14 {dimension_numbers = #tpu.dot_dimension_numbers<[2], [2], [1], [1], [0, 0, 0, 1, 1, 1], [0], [0]>} : vector<2x16x16xbf16>, vector<2x16x16xbf16>, vector<2x16x16xf32> -> vector<2x16x16xf32>
    "tpu.trace_stop"() : () -> ()
    %cst_15 = arith.constant 2.500000e-01 : f32
    %48 = vector.broadcast %cst_15 : f32 to vector<2x16x16xf32>
    %49 = arith.mulf %47, %48 : vector<2x16x16xf32>
    %cst_16 = arith.constant dense<0xFF800000> : vector<2x16xf32>
    %50 = vector.multi_reduction <maximumf>, %49, %cst_16 [2] : vector<2x16x16xf32> to vector<2x16xf32>
    %51 = vector.shape_cast %50 : vector<2x16xf32> to vector<2x16x1xf32>
    %52 = vector.broadcast %51 : vector<2x16x1xf32> to vector<2x16x16xf32>
    %53 = arith.subf %49, %52 : vector<2x16x16xf32>
    %54 = math.exp %53 : vector<2x16x16xf32>
    %cst_17 = arith.constant dense<0.000000e+00> : vector<2x16xf32>
    %55 = vector.multi_reduction <add>, %54, %cst_17 [2] : vector<2x16x16xf32> to vector<2x16xf32>
    %56 = vector.shape_cast %55 : vector<2x16xf32> to vector<2x16x1xf32>
    %57 = tpu.reciprocal %56 {approx = true} : vector<2x16x1xf32> -> vector<2x16x1xf32>
    %58 = vector.broadcast %57 : vector<2x16x1xf32> to vector<2x16x16xf32>
    %59 = arith.mulf %54, %58 : vector<2x16x16xf32>
    %60 = arith.truncf %59 : vector<2x16x16xf32> to vector<2x16x16xbf16>
    "tpu.trace_start"() <{level = 10 : i32, message = "nqk,nkd->nqd"}> : () -> ()
    %cst_18 = arith.constant dense<0.000000e+00> : vector<2x16x16xf32>
    %61 = tpu.matmul %60, %46, %cst_18 {dimension_numbers = #tpu.dot_dimension_numbers<[2], [1], [1], [2], [0, 0, 0, 1, 1, 2], [0], [0]>} : vector<2x16x16xbf16>, vector<2x16x16xbf16>, vector<2x16x16xf32> -> vector<2x16x16xf32>
    "tpu.trace_stop"() : () -> ()
    %62 = vector.shape_cast %61 : vector<2x16x16xf32> to vector<32x16xf32>
    %63 = vector.extract_strided_slice %17 {offsets = [0, 16], sizes = [32, 16], strides = [1, 1]} : vector<32x96xf32> to vector<32x16xf32>
    %64 = arith.mulf %63, %63 : vector<32x16xf32>
    %cst_19 = arith.constant dense<0.000000e+00> : vector<32xf32>
    %65 = vector.multi_reduction <add>, %64, %cst_19 [1] : vector<32x16xf32> to vector<32xf32>
    %66 = vector.shape_cast %65 : vector<32xf32> to vector<32x1xf32>
    %cst_20 = arith.constant 1.600000e+01 : f32
    %67 = vector.broadcast %cst_20 : f32 to vector<32x1xf32>
    %68 = arith.divf %66, %67 : vector<32x1xf32>
    %cst_21 = arith.constant 9.99999997E-7 : f32
    %69 = vector.broadcast %cst_21 : f32 to vector<32x1xf32>
    %70 = arith.addf %68, %69 : vector<32x1xf32>
    %71 = math.rsqrt %70 : vector<32x1xf32>
    %72 = vector.broadcast %71 : vector<32x1xf32> to vector<32x16xf32>
    %73 = arith.mulf %63, %72 : vector<32x16xf32>
    %74 = vector.extract_strided_slice %17 {offsets = [0, 48], sizes = [32, 16], strides = [1, 1]} : vector<32x96xf32> to vector<32x16xf32>
    %75 = arith.mulf %74, %74 : vector<32x16xf32>
    %cst_22 = arith.constant dense<0.000000e+00> : vector<32xf32>
    %76 = vector.multi_reduction <add>, %75, %cst_22 [1] : vector<32x16xf32> to vector<32xf32>
    %77 = vector.shape_cast %76 : vector<32xf32> to vector<32x1xf32>
    %cst_23 = arith.constant 1.600000e+01 : f32
    %78 = vector.broadcast %cst_23 : f32 to vector<32x1xf32>
    %79 = arith.divf %77, %78 : vector<32x1xf32>
    %cst_24 = arith.constant 9.99999997E-7 : f32
    %80 = vector.broadcast %cst_24 : f32 to vector<32x1xf32>
    %81 = arith.addf %79, %80 : vector<32x1xf32>
    %82 = math.rsqrt %81 : vector<32x1xf32>
    %83 = vector.broadcast %82 : vector<32x1xf32> to vector<32x16xf32>
    %84 = arith.mulf %74, %83 : vector<32x16xf32>
    %85 = vector.extract_strided_slice %17 {offsets = [0, 80], sizes = [32, 16], strides = [1, 1]} : vector<32x96xf32> to vector<32x16xf32>
    %86 = vector.shape_cast %73 : vector<32x16xf32> to vector<2x16x16xf32>
    %87 = arith.truncf %86 : vector<2x16x16xf32> to vector<2x16x16xbf16>
    %88 = vector.shape_cast %84 : vector<32x16xf32> to vector<2x16x16xf32>
    %89 = arith.truncf %88 : vector<2x16x16xf32> to vector<2x16x16xbf16>
    %90 = vector.shape_cast %85 : vector<32x16xf32> to vector<2x16x16xf32>
    %91 = arith.truncf %90 : vector<2x16x16xf32> to vector<2x16x16xbf16>
    "tpu.trace_start"() <{level = 10 : i32, message = "nqd,nkd->nqk"}> : () -> ()
    %cst_25 = arith.constant dense<0.000000e+00> : vector<2x16x16xf32>
    %92 = tpu.matmul %87, %89, %cst_25 {dimension_numbers = #tpu.dot_dimension_numbers<[2], [2], [1], [1], [0, 0, 0, 1, 1, 1], [0], [0]>} : vector<2x16x16xbf16>, vector<2x16x16xbf16>, vector<2x16x16xf32> -> vector<2x16x16xf32>
    "tpu.trace_stop"() : () -> ()
    %cst_26 = arith.constant 2.500000e-01 : f32
    %93 = vector.broadcast %cst_26 : f32 to vector<2x16x16xf32>
    %94 = arith.mulf %92, %93 : vector<2x16x16xf32>
    %cst_27 = arith.constant dense<0xFF800000> : vector<2x16xf32>
    %95 = vector.multi_reduction <maximumf>, %94, %cst_27 [2] : vector<2x16x16xf32> to vector<2x16xf32>
    %96 = vector.shape_cast %95 : vector<2x16xf32> to vector<2x16x1xf32>
    %97 = vector.broadcast %96 : vector<2x16x1xf32> to vector<2x16x16xf32>
    %98 = arith.subf %94, %97 : vector<2x16x16xf32>
    %99 = math.exp %98 : vector<2x16x16xf32>
    %cst_28 = arith.constant dense<0.000000e+00> : vector<2x16xf32>
    %100 = vector.multi_reduction <add>, %99, %cst_28 [2] : vector<2x16x16xf32> to vector<2x16xf32>
    %101 = vector.shape_cast %100 : vector<2x16xf32> to vector<2x16x1xf32>
    %102 = tpu.reciprocal %101 {approx = true} : vector<2x16x1xf32> -> vector<2x16x1xf32>
    %103 = vector.broadcast %102 : vector<2x16x1xf32> to vector<2x16x16xf32>
    %104 = arith.mulf %99, %103 : vector<2x16x16xf32>
    %105 = arith.truncf %104 : vector<2x16x16xf32> to vector<2x16x16xbf16>
    "tpu.trace_start"() <{level = 10 : i32, message = "nqk,nkd->nqd"}> : () -> ()
    %cst_29 = arith.constant dense<0.000000e+00> : vector<2x16x16xf32>
    %106 = tpu.matmul %105, %91, %cst_29 {dimension_numbers = #tpu.dot_dimension_numbers<[2], [1], [1], [2], [0, 0, 0, 1, 1, 2], [0], [0]>} : vector<2x16x16xbf16>, vector<2x16x16xbf16>, vector<2x16x16xf32> -> vector<2x16x16xf32>
    "tpu.trace_stop"() : () -> ()
    %107 = vector.shape_cast %106 : vector<2x16x16xf32> to vector<32x16xf32>
    %108 = tpu.concatenate %62, %107 in 1 : vector<32x16xf32>, vector<32x16xf32> -> vector<32x32xf32>
    %109 = arith.truncf %108 : vector<32x32xf32> to vector<32x32xbf16>
    %c0_30 = arith.constant 0 : index
    %c0_31 = arith.constant 0 : index
    %c0_32 = arith.constant 0 : index
    %110 = vector.load %arg6[%c0_30, %c0_31, %c0_32] : memref<1x32x32xbf16, #tpu.memory_space<vmem>>, vector<1x32x32xbf16>
    %111 = vector.shape_cast %110 : vector<1x32x32xbf16> to vector<32x32xbf16>
    %cst_33 = arith.constant dense<0.000000e+00> : vector<32x32xf32>
    %112 = tpu.matmul %109, %111, %cst_33 {dimension_numbers = #tpu.dot_dimension_numbers<[1], [0], [0], [1], [0, 0, 1, 1], [], []>} : vector<32x32xbf16>, vector<32x32xbf16>, vector<32x32xf32> -> vector<32x32xf32>
    %c0_34 = arith.constant 0 : index
    %c0_35 = arith.constant 0 : index
    %c0_36 = arith.constant 0 : index
    %113 = vector.load %arg7[%c0_34, %c0_35, %c0_36] : memref<1x1x32xf32, #tpu.memory_space<vmem>>, vector<1x1x32xf32>
    %114 = vector.shape_cast %113 : vector<1x1x32xf32> to vector<1x32xf32>
    %115 = vector.broadcast %114 : vector<1x32xf32> to vector<32x32xf32>
    %116 = arith.mulf %112, %115 : vector<32x32xf32>
    %117 = arith.addf %3, %116 : vector<32x32xf32>
    %118 = arith.mulf %117, %117 : vector<32x32xf32>
    %cst_37 = arith.constant dense<0.000000e+00> : vector<32xf32>
    %119 = vector.multi_reduction <add>, %118, %cst_37 [1] : vector<32x32xf32> to vector<32xf32>
    %120 = vector.shape_cast %119 : vector<32xf32> to vector<32x1xf32>
    %cst_38 = arith.constant 3.200000e+01 : f32
    %121 = vector.broadcast %cst_38 : f32 to vector<32x1xf32>
    %122 = arith.divf %120, %121 : vector<32x1xf32>
    %cst_39 = arith.constant 9.99999997E-7 : f32
    %123 = vector.broadcast %cst_39 : f32 to vector<32x1xf32>
    %124 = arith.addf %122, %123 : vector<32x1xf32>
    %125 = math.rsqrt %124 : vector<32x1xf32>
    %126 = vector.broadcast %125 : vector<32x1xf32> to vector<32x32xf32>
    %127 = arith.mulf %117, %126 : vector<32x32xf32>
    %128 = arith.truncf %127 : vector<32x32xf32> to vector<32x32xbf16>
    %c0_40 = arith.constant 0 : index
    %c0_41 = arith.constant 0 : index
    %c0_42 = arith.constant 0 : index
    %129 = vector.load %arg8[%c0_40, %c0_41, %c0_42] : memref<1x32x64xbf16, #tpu.memory_space<vmem>>, vector<1x32x64xbf16>
    %130 = vector.shape_cast %129 : vector<1x32x64xbf16> to vector<32x64xbf16>
    %cst_43 = arith.constant dense<0.000000e+00> : vector<32x64xf32>
    %131 = tpu.matmul %128, %130, %cst_43 {dimension_numbers = #tpu.dot_dimension_numbers<[1], [0], [0], [1], [0, 0, 1, 1], [], []>} : vector<32x32xbf16>, vector<32x64xbf16>, vector<32x64xf32> -> vector<32x64xf32>
    %cst_44 = arith.constant 0.000000e+00 : f32
    %132 = vector.broadcast %cst_44 : f32 to vector<32x64xf32>
    %133 = arith.maximumf %131, %132 : vector<32x64xf32>
    %134 = arith.mulf %133, %133 : vector<32x64xf32>
    %135 = arith.truncf %134 : vector<32x64xf32> to vector<32x64xbf16>
    %c0_45 = arith.constant 0 : index
    %c0_46 = arith.constant 0 : index
    %c0_47 = arith.constant 0 : index
    %136 = vector.load %arg9[%c0_45, %c0_46, %c0_47] : memref<1x64x32xbf16, #tpu.memory_space<vmem>>, vector<1x64x32xbf16>
    %137 = vector.shape_cast %136 : vector<1x64x32xbf16> to vector<64x32xbf16>
    %cst_48 = arith.constant dense<0.000000e+00> : vector<32x32xf32>
    %138 = tpu.matmul %135, %137, %cst_48 {dimension_numbers = #tpu.dot_dimension_numbers<[1], [0], [0], [1], [0, 0, 1, 1], [], []>} : vector<32x64xbf16>, vector<64x32xbf16>, vector<32x32xf32> -> vector<32x32xf32>
    %c0_49 = arith.constant 0 : index
    %c0_50 = arith.constant 0 : index
    %c0_51 = arith.constant 0 : index
    %139 = vector.load %arg10[%c0_49, %c0_50, %c0_51] : memref<1x1x32xf32, #tpu.memory_space<vmem>>, vector<1x1x32xf32>
    %140 = vector.shape_cast %139 : vector<1x1x32xf32> to vector<1x32xf32>
    %141 = vector.broadcast %140 : vector<1x32xf32> to vector<32x32xf32>
    %142 = arith.mulf %138, %141 : vector<32x32xf32>
    %143 = arith.addf %117, %142 : vector<32x32xf32>
    %c0_52 = arith.constant 0 : index
    %c0_53 = arith.constant 0 : index
    %144 = vector.load %arg13[%c0_52, %c0_53] : memref<32x32xf32, #tpu.memory_space<vmem>>, vector<32x32xf32>
    tpu.vector_store %arg13[%c0_52, %c0_53], %143 {strides = array<i32>} : memref<32x32xf32, #tpu.memory_space<vmem>>, vector<32x32xf32>,
    %c1_i32 = arith.constant 1 : i32
    %145 = arith.cmpi eq, %arg1, %c1_i32 : i32
    %146 = arith.extui %145 : i1 to i32
    %c0_i32_54 = arith.constant 0 : i32
    %147 = arith.cmpi ne, %146, %c0_i32_54 : i32
    scf.if %147 {
      %148 = vector.shape_cast %143 : vector<32x32xf32> to vector<2x16x32xf32>
      %cst_55 = arith.constant dense<0.000000e+00> : vector<2x32xf32>
      %149 = vector.multi_reduction <add>, %148, %cst_55 [1] : vector<2x16x32xf32> to vector<2x32xf32>
      %cst_56 = arith.constant 1.600000e+01 : f32
      %150 = vector.broadcast %cst_56 : f32 to vector<2x32xf32>
      %151 = arith.divf %149, %150 : vector<2x32xf32>
      %152 = arith.mulf %151, %151 : vector<2x32xf32>
      %cst_57 = arith.constant dense<0.000000e+00> : vector<2xf32>
      %153 = vector.multi_reduction <add>, %152, %cst_57 [1] : vector<2x32xf32> to vector<2xf32>
      %154 = vector.shape_cast %153 : vector<2xf32> to vector<2x1xf32>
      %cst_58 = arith.constant 3.200000e+01 : f32
      %155 = vector.broadcast %cst_58 : f32 to vector<2x1xf32>
      %156 = arith.divf %154, %155 : vector<2x1xf32>
      %cst_59 = arith.constant 9.99999997E-7 : f32
      %157 = vector.broadcast %cst_59 : f32 to vector<2x1xf32>
      %158 = arith.addf %156, %157 : vector<2x1xf32>
      %159 = math.rsqrt %158 : vector<2x1xf32>
      %160 = vector.broadcast %159 : vector<2x1xf32> to vector<2x32xf32>
      %161 = arith.mulf %151, %160 : vector<2x32xf32>
      %c0_60 = arith.constant 0 : index
      %c0_61 = arith.constant 0 : index
      %162 = vector.load %arg11[%c0_60, %c0_61] : memref<32x128xf32, #tpu.memory_space<vmem>>, vector<32x128xf32>
      %cst_62 = arith.constant dense<0.000000e+00> : vector<2x128xf32>
      %163 = tpu.matmul %161, %162, %cst_62 {dimension_numbers = #tpu.dot_dimension_numbers<[1], [0], [0], [1], [0, 0, 1, 1], [], []>} : vector<2x32xf32>, vector<32x128xf32>, vector<2x128xf32> -> vector<2x128xf32>
      %c0_63 = arith.constant 0 : index
      %c0_64 = arith.constant 0 : index
      %164 = vector.load %arg12[%c0_63, %c0_64] : memref<2x128xf32, #tpu.memory_space<vmem>>, vector<2x128xf32>
      tpu.vector_store %arg12[%c0_63, %c0_64], %163 {strides = array<i32>} : memref<2x128xf32, #tpu.memory_space<vmem>>, vector<2x128xf32>,
    } else {
    }
    return
  }
  func.func @transform_0(%arg0: i32, %arg1: i32) -> (i32, i32, i32) {
    %c0_i32 = arith.constant 0 : i32
    %c0_i32_0 = arith.constant 0 : i32
    %c0_i32_1 = arith.constant 0 : i32
    return %arg0, %c0_i32, %c0_i32_0 : i32, i32, i32
  }
  func.func @transform_1(%arg0: i32, %arg1: i32) -> (i32, i32) {
    %c0_i32 = arith.constant 0 : i32
    %c0_i32_0 = arith.constant 0 : i32
    %c0_i32_1 = arith.constant 0 : i32
    return %c0_i32, %c0_i32_0 : i32, i32
  }
  func.func @transform_2(%arg0: i32, %arg1: i32) -> (i32, i32) {
    %c0_i32 = arith.constant 0 : i32
    %c0_i32_0 = arith.constant 0 : i32
    %c0_i32_1 = arith.constant 0 : i32
    return %c0_i32, %c0_i32_0 : i32, i32
  }
  func.func @transform_3(%arg0: i32, %arg1: i32) -> (i32, i32, i32) {
    %c0_i32 = arith.constant 0 : i32
    %c0_i32_0 = arith.constant 0 : i32
    %c0_i32_1 = arith.constant 0 : i32
    return %arg1, %c0_i32, %c0_i32_0 : i32, i32, i32
  }
  func.func @transform_4(%arg0: i32, %arg1: i32) -> (i32, i32, i32) {
    %c0_i32 = arith.constant 0 : i32
    %c0_i32_0 = arith.constant 0 : i32
    %c0_i32_1 = arith.constant 0 : i32
    return %arg1, %c0_i32, %c0_i32_0 : i32, i32, i32
  }
  func.func @transform_5(%arg0: i32, %arg1: i32) -> (i32, i32, i32) {
    %c0_i32 = arith.constant 0 : i32
    %c0_i32_0 = arith.constant 0 : i32
    %c0_i32_1 = arith.constant 0 : i32
    return %arg1, %c0_i32, %c0_i32_0 : i32, i32, i32
  }
  func.func @transform_6(%arg0: i32, %arg1: i32) -> (i32, i32, i32) {
    %c0_i32 = arith.constant 0 : i32
    %c0_i32_0 = arith.constant 0 : i32
    %c0_i32_1 = arith.constant 0 : i32
    return %arg1, %c0_i32, %c0_i32_0 : i32, i32, i32
  }
  func.func @transform_7(%arg0: i32, %arg1: i32) -> (i32, i32, i32) {
    %c0_i32 = arith.constant 0 : i32
    %c0_i32_0 = arith.constant 0 : i32
    %c0_i32_1 = arith.constant 0 : i32
    return %arg1, %c0_i32, %c0_i32_0 : i32, i32, i32
  }
  func.func @transform_8(%arg0: i32, %arg1: i32) -> (i32, i32, i32) {
    %c0_i32 = arith.constant 0 : i32
    %c0_i32_0 = arith.constant 0 : i32
    %c0_i32_1 = arith.constant 0 : i32
    return %arg1, %c0_i32, %c0_i32_0 : i32, i32, i32
  }
  func.func @transform_9(%arg0: i32, %arg1: i32) -> (i32, i32) {
    %c0_i32 = arith.constant 0 : i32
    %c0_i32_0 = arith.constant 0 : i32
    %c0_i32_1 = arith.constant 0 : i32
    return %c0_i32, %c0_i32_0 : i32, i32
  }
  func.func @transform_10(%arg0: i32, %arg1: i32) -> (i32, i32) {
    %c0_i32 = arith.constant 0 : i32
    %c0_i32_0 = arith.constant 0 : i32
    return %arg0, %c0_i32 : i32, i32
  }
}

</mosaic_0001>

<bundles_post_ra>
// kernel: tpu_custom_call.1
= control target key start
LH: loop header
LB: loop body
LE: loop exit
PB: predicated region body
PF: predicated region fallthrough
CT: control target
= control target key end

     0   :  { %s2947_s0 = inlined_call_operand.vmem [shape: f32[2,16,48], index: 0, kind: input, shape index: {}]   ;;  %s2948_s1 = inlined_call_operand.vmem [shape: f32[16,32], index: 1, kind: input, shape index: {}]   ;;  %s2949_s2 = inlined_call_operand.vmem [shape: f32[48,32], index: 2, kind: input, shape index: {}]   ;;  %s2950_s3 = inlined_call_operand.vmem [shape: bf16[2,32,96], index: 3, kind: input, shape index: {}]   ;;  %s2951_s4 = inlined_call_operand.vmem [shape: bf16[2,32,32], index: 4, kind: input, shape index: {}]   ;;  %s2952_s5 = inlined_call_operand.vmem [shape: f32[2,1,32], index: 5, kind: input, shape index: {}]   ;;  %s2953_s6 = inlined_call_operand.vmem [shape: bf16[2,32,64], index: 6, kind: input, shape index: {}]   ;;  %s2954_s7 = inlined_call_operand.vmem [shape: bf16[2,64,32], index: 7, kind: input, shape index: {}]   ;;  %s2955_s8 = inlined_call_operand.vmem [shape: f32[2,1,32], index: 8, kind: input, shape index: {}]   ;;  %s2956_s9 = inlined_call_operand.hbm [shape: f32[32,128], index: 9, kind: input, shape index: {}]   ;;  %s2957_s10 = inlined_call_operand.hbm [shape: f32[2,128], index: 10, kind: output, shape index: {}]  }
   0x1   :  { %2959 = sst [smem:[#allocation9_spill]] %s2956_s9 }
   0x2   :  { %15 = vsyncpa [#allocation4], 0 }
   0x3   :  { %16 = vsyncpa [#allocation5], 0  ;;  %s2524_s13 = smov 0   ;;  %s2526_s14 = smov 0  }
   0x4   :  { %s2528_s15 = smov 0  }
   0x5 LB: > { %s2958_s16 = sadd.s32 4294967295, %s2453_s15   ;;  %s31_s17 = sadd.s32 1, %s2449_s14  ;;  %s2453_s15 = sphi %s2528_s15, %s22_s15   ;;  %s2449_s14 = sphi %s2526_s14, %s2966_s14   ;;  %s2445_s13 = sphi %s2524_s13, %s2965_s13  }
   0x6   : > { %p32_p0 = scmp.ge.s32.totalorder %s31_s17, 2  ;;  %p1986_p1 = scmp.ge.s32.totalorder %s2453_s15, 1 }
   0x7   : > { %p310_p2 = scmp.lt.s32.totalorder %s2453_s15, 3  ;;  %p2551_p4 = scmp.eq.s32.totalorder %s2958_s16, 0 }
   0x8   : > { %s2968_s17 = smov (%p32_p0, %s31_s17), 0  ;;  %s2455_s20 = smov [#allocation3]  }
   0x9   : > { %p2545_p3 = pnand %p1986_p1, %p310_p2  ;;  %s338_s21 = sshll.u32 %s2455_s20, 4  ;;  %s339_s21 = int_to_ptr.vmem [resolvable:$true] %s338_s21 }
   0xa   : > { %s2384_s22 = scalar_lea.vmem %s339_s21, 512  ;;  %p2392_p11 = scmp.lt.s32.totalorder %s339_s21, %s339_s21 }
   0xb   : > { %p2225_p5 = pneg %p2545_p3  ;;  %p2385_p8 = scmp.ne.s32.totalorder %s339_s21, %s2384_s22 }
   0xc   : > { %p2393_p12 = scmp.lt.s32.totalorder %s2384_s22, %s2384_s22 }
   0xd   : > { %p2226_p6 = pnand %p2551_p4, %p2225_p5 }
   0xe   : > { %p2394_p13 = por %p2393_p12, %p2392_p11 }
   0xf   : > { %p2375_p7 = pneg %p2226_p6 }
  0x11   : > { %p2387_p9 = pnand %p2385_p8, %p2375_p7 }
  0x13   : > { %p2388_p10 = pneg %p2387_p9 }
  0x15   : > { %p2395_p0 = pnand %p2394_p13, %p2388_p10 }
  0x17   : > { %2398 = shalt.err (!%p2395_p0)
}
  0x18   : > { %s2456_s23 = smov 128   ;;  %s2457_s24 = smov 8  }
  0x19   : > { %s2962_s9 = sld [smem:[#allocation9_spill]] }
  0x1b   : > { %398 = sbr.rel (%p2545_p3) target bundleno = 3619 (0xe23), region = 60 }
  0x1f   : > { %2228 = dma.hbm_to_vmem [thread:$0]  (!%p2226_p6), %s2962_s9, 512, %s339_s21, [#allocation4], %s2456_s23, %s2456_s23, %s2457_s24  }
  0x20   : > { %2436 = dma.done.wait (%p2551_p4), [#allocation4], 512  }
  0x21   : > { %2438 = vsyncadd (%p2551_p4), [#allocation4], 4294966784  ;;  %p465_p1 = scmp.lt.s32.totalorder %s2445_s13, 1  ;;  %p2000_p2 = scmp.ne.s32.totalorder %s2445_s13, 0 }
  0x23   : > { %s2570_s27 = scalar_select %p465_p1, %s2445_s13, 1 }
  0x24   : > { %495 = sbr.rel (%p2000_p2) target bundleno = 253 (0xfd), region = 68 }
  0x25   : > { %s2039_s28 = sshll.u32 %s2570_s27, 4  ;;  %s477_s11 = scalar_lea.vmem %s2952_s5, %s2570_s27 }
  0x26   : > { %s2580_s20 = scalar_lea.vmem %s2950_s3, %s2039_s28  ;;  %s2585_s22 = scalar_lea.vmem %s2951_s4, %s2039_s28 }
  0x27   : > { %s2590_s25 = scalar_lea.vmem %s2953_s6, %s2039_s28  ;;  %s2042_s26 = sshll.u32 %s2570_s27, 5 }
  0x28   : > { %s2596_s29 = scalar_lea.vmem %s2954_s7, %s2042_s26  ;;  %s490_s18 = scalar_lea.vmem %s2955_s8, %s2570_s27 }
  0x29   : > { %v505_v0 = vld [vmem:[%s2949_s2 + $0x28] sm:$0xff]  ;;  %v504_v1 = vld [vmem:[%s2949_s2 + $0x20] sm:$0xff]  ;;  %v503_v2 = vld [vmem:[%s2949_s2 + $0x18] sm:$0xff]  ;;  %vm506_vm0 = vcmask 392192   ;;  %vm610_vm1 = vcmask 261120  }
  0x2a   : > { %2092 = vmatprep.subr.mxu0 %v505_v0  ;;  %2205 = vmatprep.subr.mxu1 %v505_v0  ;;  %v502_v3 = vld [vmem:[%s2949_s2 + $0x10] sm:$0xff]  ;;  %v501_v4 = vld [vmem:[%s2949_s2 + $0x8] sm:$0xff]  ;;  %v500_v5 = vld [vmem:[%s2949_s2] sm:$0xff] }
  0x2b   : > { %2093 = vmatpush3.msra.mxu0 %v505_v0  ;;  %2211 = vmatpush3.msra.mxu1 %v505_v0  ;;  %v496_v6 = vld [vmem:[%s2947_s0] sm:$0xff]  ;;  %v498_v7 = vld [vmem:[%s2947_s0 + $0x10] sm:$0xff]  ;;  %v497_v8 = vld [vmem:[%s2947_s0 + $0x8] sm:$0xff] }
  0x2c   : > { %2094 = vmatprep.subr.mxu0 %v504_v1  ;;  %2206 = vmatprep.subr.mxu1 %v504_v1  ;;  %v499_v9 = vld [vmem:[%s2947_s0 + $0x18] sm:$0xff]  ;;  %v605_v10 = vld [vmem:[%s2948_s1 + $0x8] sm:$0xff]  ;;  %v604_v13 = vld [vmem:[%s2948_s1] sm:$0xff] }
  0x2d   : > { %2095 = vmatpush3.msra.mxu0 %v504_v1  ;;  %2212 = vmatpush3.msra.mxu1 %v504_v1 }
  0x2e   : > { %2096 = vmatprep.subr.mxu0 %v503_v2  ;;  %2207 = vmatprep.subr.mxu1 %v503_v2 }
  0x2f   : > { %2097 = vmatpush3.msra.mxu0 %v503_v2  ;;  %2213 = vmatpush3.msra.mxu1 %v503_v2 }
  0x30   : > { %2098 = vmatprep.subr.mxu0 %v502_v3  ;;  %2208 = vmatprep.subr.mxu1 %v502_v3 }
  0x31   : > { %2099 = vmatpush3.msra.mxu0 %v502_v3  ;;  %2214 = vmatpush3.msra.mxu1 %v502_v3 }
  0x32   : > { %2100 = vmatprep.subr.mxu0 %v501_v4  ;;  %2209 = vmatprep.subr.mxu1 %v501_v4 }
  0x33   : > { %2101 = vmatpush3.msra.mxu0 %v501_v4  ;;  %2215 = vmatpush3.msra.mxu1 %v501_v4 }
  0x34   : > { %2102 = vmatprep.subr.mxu0 %v500_v5  ;;  %2210 = vmatprep.subr.mxu1 %v500_v5 }
  0x35   : > { %2103 = vmatpush3.msra.mxu0 %v500_v5  ;;  %2216 = vmatpush3.msra.mxu1 %v500_v5 }
  0x36   : > { %2104 = vmatprep.mubr.msk.f32.mxu0 %vm506_vm0, %v496_v6  ;;  %2107 = vmatprep.mubr.msk.f32.mxu1 %vm506_vm0, %v498_v7 }
  0x37   : > { %2105 = vmatmul.mubr.msk.f32.vlgmr.msra.gmra.mxu0 %vm506_vm0, %v497_v8  ;;  %2108 = vmatmul.mubr.msk.f32.vlgmr.msra.gmra.mxu1 %vm506_vm0, %v499_v9 }
  0xf7   : > { %v2106_v11 = vpop.f32.mrf.mxu0  ;;  %v2109_v12 = vpop.f32.mrf.mxu1 }
  0xf8   : > { %v607_v14 = vadd.f32 %v2106_v11, %v605_v10  ;;  %v609_v15 = vadd.f32 %v2109_v12, %v605_v10 }
  0xf9   : > { %v585_v16 = vpop.f32.mrf.mxu0  ;;  %v595_v17 = vpop.f32.mrf.mxu1 }
  0xfa   : > { %612 = vst.msk [vmem:[#allocation2 + $0x8] sm:$0xff] %vm610_vm1, %v607_v14  ;;  %614 = vst.msk [vmem:[#allocation2 + $0x18] sm:$0xff] %vm610_vm1, %v609_v15  ;;  %v606_v18 = vadd.f32 %v604_v13, %v585_v16  ;;  %v608_v19 = vadd.f32 %v604_v13, %v595_v17 }
  0xfc   : > { %611 = vst.msk [vmem:[#allocation2] sm:$0xff] %vm610_vm1, %v606_v18  ;;  %613 = vst.msk [vmem:[#allocation2 + $0x10] sm:$0xff] %vm610_vm1, %v608_v19 }
  0xfd PF: > { %vm623_vm2 = vcmask 261120   ;;  %v2281_v32 = vld [vmem:[%s2580_s20 + $0x8] sm:$0xff]   ;;  %v2282_v33 = vld [vmem:[%s2580_s20] sm:$0xff]   ;;  %s2458_s20 = smov 96   ;;  %vm730_vm3 = vcmask 130048   ;;  %vm2460_vm4 = vmmov 0  }
  0xfe   : > { %2110 = vmatprep.subr.bf16.mxu0 %v2281_v32  ;;  %s2461_s9 = smov 80   ;;  %s2462_s16 = smov 112   ;;  %vm1645_vm5 = vcmask 523264  }
  0xff   : > { %2111 = vmatpush3.bf16.msra.mxu0 %v2281_v32  ;;  %s2463_s24 = smov 64   ;;  %s2464_s26 = smov 48  }
 0x100   : > { %2112 = vmatprep.subr.bf16.mxu0 %v2282_v33  ;;  %s2465_s30 = smov 16   ;;  %p2033_p3 = scmp.ne.s32.totalorder %s2445_s13, 1 }
 0x101   : > { %v2643_v22 = vld [vmem:[#allocation2 + $0x18] sm:$0xff]  ;;  %v2651_v26 = vld [vmem:[#allocation2 + $0x8] sm:$0xff] }
 0x102   : > { %v622_v25 = vmul.f32 %v2643_v22, %v2643_v22  ;;  %v620_v27 = vmul.f32 %v2651_v26, %v2651_v26 }
 0x103   : > { %v2639_v20 = vld [vmem:[#allocation2 + $0x10] sm:$0xff]  ;;  %v2641_v21 = vld [vmem:[#allocation2] sm:$0xff]  ;;  %2113 = vmatpush3.bf16.msra.mxu0 %v2282_v33 }
 0x104   : > { %v621_v23 = vmul.f32 %v2639_v20, %v2639_v20  ;;  %v619_v24 = vmul.f32 %v2641_v21, %v2641_v21  ;;  %v633_v30 = vsel %vm623_vm2, %v622_v25, 0.0  ;;  %v627_v31 = vsel %vm623_vm2, %v620_v27, 0.0 }
 0x106   : > { %v630_v28 = vsel %vm623_vm2, %v621_v23, 0.0  ;;  %v624_v29 = vsel %vm623_vm2, %v619_v24, 0.0 }
 0x107   : > { %631 = vadd.xlane.f32.xlu1 %v630_v28  ;;  %625 = vadd.xlane.f32.xlu0 %v624_v29  ;;  %v2459_v28 = vmov 0.0  }
 0x108   : > { %2118 = vmatprep.subr.bf16.mxu1 %v2459_v28  ;;  %2124 = vmatprep.subr.bf16.mxu0 %v2459_v28 }
 0x109   : > { %2120 = vmatprep.mubr.msk.bf16.mxu1 %vm2460_vm4, %v2459_v28 }
 0x10b   : > { %634 = vadd.xlane.f32.xlu1 %v633_v30  ;;  %628 = vadd.xlane.f32.xlu0 %v627_v31 }
 0x190   : > { %v632_v34 = vpop.xlane.xlu1 %631  ;;  %v626_v35 = vpop.xlane.xlu0 %625 }
 0x191   : > { %v639_v36 = vmul.f32 0.03125, %v632_v34  ;;  %v637_v37 = vmul.f32 0.03125, %v626_v35 }
 0x193   : > { %v643_v38 = vadd.f32 1e-06, %v639_v36  ;;  %v641_v39 = vadd.f32 1e-06, %v637_v37 }
 0x194   : > { %v635_v40 = vpop.xlane.xlu1 %634  ;;  %v629_v41 = vpop.xlane.xlu0 %628 }
 0x195   : > { %v640_v42 = vmul.f32 0.03125, %v635_v40  ;;  %v638_v43 = vmul.f32 0.03125, %v629_v41  ;;  %2291 = vrsqrt.f32 %v643_v38 }
 0x196   : > { %2293 = vrsqrt.f32 %v641_v39 }
 0x197   : > { %v644_v44 = vadd.f32 1e-06, %v640_v42  ;;  %v642_v45 = vadd.f32 1e-06, %v638_v43 }
 0x199   : > { %2295 = vrsqrt.f32 %v644_v44 }
 0x19a   : > { %2297 = vrsqrt.f32 %v642_v45 }
 0x1a2   : > { %v2292_v46 = vpop.eup %2291 }
 0x1a3   : > { %v2294_v47 = vpop.eup %2293  ;;  %v651_v50 = vmul.f32 %v2292_v46, %v2639_v20 }
 0x1a4   : > { %v649_v52 = vmul.f32 %v2294_v47, %v2641_v21 }
 0x1a6   : > { %v2296_v48 = vpop.eup %2295 }
 0x1a7   : > { %v2298_v49 = vpop.eup %2297  ;;  %v652_v51 = vmul.f32 %v2296_v48, %v2643_v22 }
 0x1a8   : > { %v650_v53 = vmul.f32 %v2298_v49, %v2651_v26 }
 0x1a9   : > { %v654_v54 = vpack.c.bf16 %v652_v51, %v651_v50 }
 0x1aa   : > { %v653_v55 = vpack.c.bf16 %v650_v53, %v649_v52 }
 0x1ac   : > { %2114 = vmatprep.mubr.msk.bf16.mxu0 %vm623_vm2, %v653_v55 }
 0x1ad   : > { %2115 = vmatmul.mubr.msk.bf16.vlgmr.msra.gmra.mxu0 %vm623_vm2, %v654_v54 }
 0x1ae   : > { %2126 = vmatprep.mubr.msk.bf16.mxu0 %vm2460_vm4, %v2459_v28 }
 0x26d   : > { %v2667_v56 = vpop.f32.mrf.mxu0 }
 0x26e   : > { %v2671_v57 = vmul.f32 %v2667_v56, %v2667_v56 }
 0x26f   : > { %v2673_v58 = vpop.f32.mrf.mxu0 }
 0x270   : > { %768 = vrot.lane.b32.xlu1 %v2671_v57, %s2458_s20  ;;  %v2679_v59 = vmul.f32 %v2673_v58, %v2673_v58  ;;  %v737_v11 = vsel %vm730_vm3, %v2671_v57, 0.0 }
 0x271   : > { %v2681_v60 = vpop.f32.mrf.mxu0 }
 0x272   : > { %764 = vrot.lane.b32.xlu0 %v2679_v59, %s2458_s20  ;;  %v2695_v63 = vmul.f32 %v2681_v60, %v2681_v60  ;;  %v731_v9 = vsel %vm730_vm3, %v2679_v59, 0.0 }
 0x273   : > { %v2685_v61 = vpop.f32.mrf.mxu0 }
 0x274   : > { %v2689_v62 = vmul.f32 %v2685_v61, %v2685_v61  ;;  %v740_v10 = vsel %vm730_vm3, %v2695_v63, 0.0 }
 0x276   : > { %766 = vrot.lane.b32.xlu1 %v2689_v62, %s2458_s20  ;;  %v734_v8 = vsel %vm730_vm3, %v2689_v62, 0.0 }
 0x27a   : > { %770 = vrot.lane.b32.xlu1 %v2695_v63, %s2458_s20 }
 0x2e2   : > { %v769_v0 = vpop.permute.xlu1 %768 }
 0x2e3   : > { %v782_v4 = vsel %vm730_vm3, %v769_v0, 0.0 }
 0x2e4   : > { %v765_v1 = vpop.permute.xlu0 %764 }
 0x2e5   : > { %v776_v2 = vsel %vm730_vm3, %v765_v1, 0.0 }
 0x2e6   : > { %777 = vadd.xlane.f32.xlu0 %v776_v2 }
 0x2e8   : > { %v767_v3 = vpop.permute.xlu1 %766 }
 0x2e9   : > { %v779_v5 = vsel %vm730_vm3, %v767_v3, 0.0 }
 0x2ea   : > { %783 = vadd.xlane.f32.xlu0 %v782_v4  ;;  %780 = vadd.xlane.f32.xlu1 %v779_v5 }
 0x2ec   : > { %v771_v6 = vpop.permute.xlu1 %770 }
 0x2ed   : > { %v785_v7 = vsel %vm730_vm3, %v771_v6, 0.0 }
 0x2ee   : > { %786 = vadd.xlane.f32.xlu0 %v785_v7  ;;  %735 = vadd.xlane.f32.xlu1 %v734_v8 }
 0x2f2   : > { %732 = vadd.xlane.f32.xlu0 %v731_v9  ;;  %741 = vadd.xlane.f32.xlu1 %v740_v10 }
 0x2f6   : > { %738 = vadd.xlane.f32.xlu0 %v737_v11 }
 0x36f   : > { %v778_v12 = vpop.xlane.xlu0 %777 }
 0x370   : > { %v788_v13 = vmul.f32 0.0625, %v778_v12 }
 0x372   : > { %v792_v14 = vadd.f32 1e-06, %v788_v13 }
 0x373   : > { %v784_v15 = vpop.xlane.xlu0 %783  ;;  %v781_v16 = vpop.xlane.xlu1 %780 }
 0x374   : > { %v790_v17 = vmul.f32 0.0625, %v784_v15  ;;  %v789_v18 = vmul.f32 0.0625, %v781_v16  ;;  %2299 = vrsqrt.f32 %v792_v14 }
 0x376   : > { %v794_v19 = vadd.f32 1e-06, %v790_v17  ;;  %v793_v23 = vadd.f32 1e-06, %v789_v18 }
 0x377   : > { %v787_v24 = vpop.xlane.xlu0 %786  ;;  %v736_v40 = vpop.xlane.xlu1 %735 }
 0x378   : > { %v791_v25 = vmul.f32 0.0625, %v787_v24  ;;  %2301 = vrsqrt.f32 %v793_v23  ;;  %v745_v43 = vmul.f32 0.0625, %v736_v40 }
 0x379   : > { %2303 = vrsqrt.f32 %v794_v19 }
 0x37a   : > { %v795_v27 = vadd.f32 1e-06, %v791_v25  ;;  %v749_v48 = vadd.f32 1e-06, %v745_v43 }
 0x37b   : > { %v733_v39 = vpop.xlane.xlu0 %732  ;;  %v742_v44 = vpop.xlane.xlu1 %741 }
 0x37c   : > { %2305 = vrsqrt.f32 %v795_v27  ;;  %v744_v41 = vmul.f32 0.0625, %v733_v39  ;;  %v747_v47 = vmul.f32 0.0625, %v742_v44 }
 0x37e   : > { %v748_v46 = vadd.f32 1e-06, %v744_v41  ;;  %v751_v50 = vadd.f32 1e-06, %v747_v47 }
 0x37f   : > { %v739_v42 = vpop.xlane.xlu0 %738 }
 0x380   : > { %v746_v45 = vmul.f32 0.0625, %v739_v42  ;;  %2307 = vrsqrt.f32 %v748_v46  ;;  %v2773_v42 = vpack.c.bf16 %v2681_v60, %v2667_v56 }
 0x381   : > { %v2300_v29 = vpop.eup %2299  ;;  %2309 = vrsqrt.f32 %v749_v48 }
 0x382   : > { %v800_v32 = vmul.f32 %v2300_v29, %v2673_v58  ;;  %v750_v49 = vadd.f32 1e-06, %v746_v45 }
 0x384   : > { %2311 = vrsqrt.f32 %v750_v49 }
 0x385   : > { %v2302_v30 = vpop.eup %2301  ;;  %2313 = vrsqrt.f32 %v751_v50 }
 0x386   : > { %v2304_v31 = vpop.eup %2303  ;;  %v801_v33 = vmul.f32 %v2302_v30, %v2685_v61 }
 0x387   : > { %v802_v36 = vmul.f32 %v2304_v31, %v2667_v56 }
 0x388   : > { %v806_v35 = vpack.c.bf16 %v801_v33, %v800_v32 }
 0x389   : > { %v2306_v34 = vpop.eup %2305 }
 0x38a   : > { %v803_v37 = vmul.f32 %v2306_v34, %v2681_v60  ;;  %811 = vrot.lane.b32.xlu0 %v806_v35, %s2458_s20 }
 0x38c   : > { %v807_v38 = vpack.c.bf16 %v803_v37, %v802_v36 }
 0x38d   : > { %v2308_v51 = vpop.eup %2307 }
 0x38e   : > { %861 = vrot.lane.b32.xlu1 %v807_v38, %s2458_s20  ;;  %1100 = vrot.lane.b32.xlu0 %v2671_v57, %s2461_s9  ;;  %v2310_v54 = vpop.eup %2309 }
 0x38f   : > { %v757_v0 = vmul.f32 %v2310_v54, %v2685_v61 }
 0x391   : > { %v2312_v55 = vpop.eup %2311 }
 0x392   : > { %1096 = vrot.lane.b32.xlu1 %v2679_v59, %s2461_s9  ;;  %1056 = vrot.lane.b32.xlu0 %v2679_v59, %s2462_s16  ;;  %v756_v59 = vmul.f32 %v2308_v51, %v2673_v58  ;;  %v758_v1 = vmul.f32 %v2312_v55, %v2667_v56 }
 0x394   : > { %v804_v2 = vpack.c.bf16 %v757_v0, %v756_v59 }
 0x396   : > { %1098 = vrot.lane.b32.xlu1 %v2689_v62, %s2461_s9  ;;  %1060 = vrot.lane.b32.xlu0 %v2671_v57, %s2462_s16 }
 0x39a   : > { %1102 = vrot.lane.b32.xlu1 %v2695_v63, %s2461_s9 }
 0x39e   : > { %1058 = vrot.lane.b32.xlu1 %v2689_v62, %s2462_s16 }
 0x3a2   : > { %1062 = vrot.lane.b32.xlu1 %v2695_v63, %s2462_s16  ;;  %v2314_v63 = vpop.eup %2313 }
 0x3a3   : > { %v759_v3 = vmul.f32 %v2314_v63, %v2681_v60 }
 0x3a5   : > { %v805_v4 = vpack.c.bf16 %v759_v3, %v758_v1 }
 0x3fc   : > { %v812_v52 = vpop.permute.xlu0 %811 }
 0x3fd   : > { %v817_v53 = vsel %vm730_vm3, %v812_v52, 0 }
 0x3fe   : > { %2119 = vmatpush3.bf16.xpose.msra.mxu1 %v817_v53 }
 0x3ff   : > { %2130 = vmatprep.subr.bf16.mxu1 %v2459_v28 }
 0x400   : > { %v862_v57 = vpop.permute.xlu1 %861  ;;  %v1101_v30 = vpop.permute.xlu0 %1100 }
 0x401   : > { %v867_v62 = vsel %vm730_vm3, %v862_v57, 0  ;;  %v1114_v35 = vsel %vm730_vm3, %v1101_v30, 0.0 }
 0x402   : > { %2125 = vmatpush3.bf16.xpose.msra.mxu0 %v867_v62 }
 0x403   : > { %2136 = vmatprep.subr.bf16.mxu0 %v2459_v28 }
 0x404   : > { %v1097_v5 = vpop.permute.xlu1 %1096  ;;  %v1057_v34 = vpop.permute.xlu0 %1056 }
 0x405   : > { %2121 = vmatmul.mubr.msk.bf16.vlgmr.msra.gmra.mxu1 %vm730_vm3, %v804_v2  ;;  %v1108_v32 = vsel %vm730_vm3, %v1097_v5, 0.0  ;;  %v1068_v38 = vsel %vm730_vm3, %v1057_v34, 0.0 }
 0x406   : > { %2132 = vmatprep.mubr.msk.bf16.mxu1 %vm2460_vm4, %v2459_v28 }
 0x408   : > { %v1099_v8 = vpop.permute.xlu1 %1098  ;;  %v1061_v40 = vpop.permute.xlu0 %1060 }
 0x409   : > { %2127 = vmatmul.mubr.msk.bf16.vlgmr.msra.gmra.mxu0 %vm730_vm3, %v805_v4  ;;  %v1111_v29 = vsel %vm730_vm3, %v1099_v8, 0.0  ;;  %v1074_v41 = vsel %vm730_vm3, %v1061_v40, 0.0 }
 0x40a   : > { %2138 = vmatprep.mubr.msk.bf16.mxu0 %vm2460_vm4, %v2459_v28 }
 0x40c   : > { %v1103_v23 = vpop.permute.xlu1 %1102 }
 0x40d   : > { %v1117_v33 = vsel %vm730_vm3, %v1103_v23, 0.0  ;;  %v2792_v23 = vpack.c.bf16 %v2685_v61, %v2673_v58 }
 0x410   : > { %v1059_v31 = vpop.permute.xlu1 %1058 }
 0x411   : > { %v1071_v36 = vsel %vm730_vm3, %v1059_v31, 0.0 }
 0x414   : > { %v1063_v37 = vpop.permute.xlu1 %1062 }
 0x415   : > { %v1077_v39 = vsel %vm730_vm3, %v1063_v37, 0.0 }
 0x4c5   : > { %v853_v6 = vpop.f32.mrf.mxu1 }
 0x4c6   : > { %v910_v7 = vmul.f32 0.25, %v853_v6 }
 0x4c7   : > { %v2122_v9 = vpop.f32.mrf.mxu1 }
 0x4c8   : > { %v914_v10 = vsel %vm730_vm3, %v910_v7, -inf }
 0x4c9   : > { %v903_v11 = vpop.f32.mrf.mxu0  ;;  %915 = vmax.xlane.f32.xlu0 %v914_v10  ;;  %v856_v12 = vpop.f32.mrf.mxu1 }
 0x4ca   : > { %v912_v13 = vmul.f32 0.25, %v903_v11  ;;  %v2754_v14 = vmul.f32 0.25, %v856_v12 }
 0x4cb   : > { %v2128_v15 = vpop.f32.mrf.mxu0  ;;  %v2123_v16 = vpop.f32.mrf.mxu1 }
 0x4cc   : > { %v920_v17 = vsel %vm730_vm3, %v912_v13, -inf  ;;  %v917_v18 = vsel %vm730_vm3, %v2754_v14, -inf }
 0x4cd   : > { %v906_v19 = vpop.f32.mrf.mxu0  ;;  %918 = vmax.xlane.f32.xlu1 %v917_v18  ;;  %921 = vmax.xlane.f32.xlu0 %v920_v17 }
 0x4ce   : > { %v2759_v24 = vmul.f32 0.25, %v906_v19 }
 0x4cf   : > { %v2129_v25 = vpop.f32.mrf.mxu0 }
 0x4d0   : > { %v923_v27 = vsel %vm730_vm3, %v2759_v24, -inf }
 0x4d1   : > { %924 = vmax.xlane.f32.xlu0 %v923_v27  ;;  %1112 = vadd.xlane.f32.xlu1 %v1111_v29 }
 0x4d5   : > { %1109 = vadd.xlane.f32.xlu0 %v1108_v32  ;;  %1118 = vadd.xlane.f32.xlu1 %v1117_v33 }
 0x4d9   : > { %1115 = vadd.xlane.f32.xlu0 %v1114_v35  ;;  %1072 = vadd.xlane.f32.xlu1 %v1071_v36 }
 0x4dd   : > { %1069 = vadd.xlane.f32.xlu0 %v1068_v38  ;;  %1078 = vadd.xlane.f32.xlu1 %v1077_v39 }
 0x4e1   : > { %1075 = vadd.xlane.f32.xlu0 %v1074_v41 }
 0x4ee   : > { %1009 = vrot.lane.b32.xlu1 %v2773_v42, %s2463_s24 }
 0x552   : > { %v916_v43 = vpop.xlane.xlu0 %915 }
 0x553   : > { %v926_v44 = vsub.f32 %v910_v7, %v916_v43 }
 0x555   : > { %v930_v48 = vmul.f32 1.442695, %v926_v44 }
 0x556   : > { %v922_v45 = vpop.xlane.xlu0 %921  ;;  %v919_v46 = vpop.xlane.xlu1 %918 }
 0x557   : > { %v928_v47 = vsub.f32 %v912_v13, %v922_v45  ;;  %v927_v27 = vsub.f32 %v2754_v14, %v919_v46 }
 0x559   : > { %v934_v49 = vmul.f32 1.442695, %v928_v47  ;;  %v932_v32 = vmul.f32 1.442695, %v927_v27 }
 0x55a   : > { %v925_v50 = vpop.xlane.xlu0 %924  ;;  %v1113_v51 = vpop.xlane.xlu1 %1112 }
 0x55b   : > { %2315 = vpow2.f32 %v934_v49  ;;  %v1121_v52 = vmul.f32 0.0625, %v1113_v51  ;;  %v929_v18 = vsub.f32 %v2759_v24, %v925_v50 }
 0x55c   : > { %2317 = vpow2.f32 %v930_v48 }
 0x55d   : > { %v1125_v53 = vadd.f32 1e-06, %v1121_v52  ;;  %v936_v29 = vmul.f32 1.442695, %v929_v18 }
 0x55e   : > { %v1110_v54 = vpop.xlane.xlu0 %1109  ;;  %v1119_v55 = vpop.xlane.xlu1 %1118 }
 0x55f   : > { %v1120_v57 = vmul.f32 0.0625, %v1110_v54  ;;  %2319 = vrsqrt.f32 %v1125_v53  ;;  %v1123_v34 = vmul.f32 0.0625, %v1119_v55 }
 0x561   : > { %v1124_v59 = vadd.f32 1e-06, %v1120_v57  ;;  %v1127_v37 = vadd.f32 1e-06, %v1123_v34 }
 0x562   : > { %v1116_v62 = vpop.xlane.xlu0 %1115  ;;  %v1073_v63 = vpop.xlane.xlu1 %1072 }
 0x563   : > { %2321 = vrsqrt.f32 %v1124_v59  ;;  %v1081_v7 = vmul.f32 0.0625, %v1073_v63  ;;  %v1122_v24 = vmul.f32 0.0625, %v1116_v62 }
 0x565   : > { %v1085_v12 = vadd.f32 1e-06, %v1081_v7  ;;  %v1126_v35 = vadd.f32 1e-06, %v1122_v24 }
 0x566   : > { %v1079_v0 = vpop.xlane.xlu1 %1078  ;;  %v1070_v1 = vpop.xlane.xlu0 %1069 }
 0x567   : > { %v1080_v5 = vmul.f32 0.0625, %v1070_v1  ;;  %v1083_v14 = vmul.f32 0.0625, %v1079_v0 }
 0x568   : > { %v2777_v2 = vpop.eup %2315 }
 0x569   : > { %v944_v3 = vsel %vm730_vm3, %v2777_v2, 0.0  ;;  %v2781_v4 = vpop.eup %2317  ;;  %v1084_v10 = vadd.f32 1e-06, %v1080_v5 }
 0x56a   : > { %945 = vadd.xlane.f32.xlu0 %v944_v3  ;;  %v1010_v6 = vpop.permute.xlu1 %1009  ;;  %v938_v8 = vsel %vm730_vm3, %v2781_v4, 0.0  ;;  %v1076_v33 = vpop.xlane.xlu0 %1075 }
 0x56b   : > { %2137 = vmatpush3.bf16.msra.mxu0 %v1010_v6  ;;  %2323 = vrsqrt.f32 %v1084_v10  ;;  %v1082_v36 = vmul.f32 0.0625, %v1076_v33 }
 0x56c   : > { %2148 = vmatprep.subr.bf16.mxu0 %v2459_v28  ;;  %v2320_v9 = vpop.eup %2319  ;;  %2325 = vrsqrt.f32 %v1085_v12 }
 0x56d   : > { %v1133_v15 = vmul.f32 %v2320_v9, %v2685_v61  ;;  %2327 = vpow2.f32 %v936_v29  ;;  %v1086_v38 = vadd.f32 1e-06, %v1082_v36 }
 0x56e   : > { %939 = vadd.xlane.f32.xlu0 %v938_v8  ;;  %2329 = vpow2.f32 %v932_v32 }
 0x56f   : > { %2331 = vrsqrt.f32 %v1126_v35 }
 0x570   : > { %v2322_v11 = vpop.eup %2321  ;;  %2333 = vrsqrt.f32 %v1127_v37 }
 0x571   : > { %v1132_v13 = vmul.f32 %v2322_v11, %v2673_v58  ;;  %2335 = vrsqrt.f32 %v1086_v38 }
 0x573   : > { %v1138_v16 = vpack.c.bf16 %v1133_v15, %v1132_v13 }
 0x575   : > { %1144 = vrot.lane.b32.xlu1 %v1138_v16, %s2461_s9 }
 0x578   : > { %v2324_v17 = vpop.eup %2323 }
 0x579   : > { %v2326_v19 = vpop.eup %2325  ;;  %v1092_v25 = vmul.f32 %v2324_v17, %v2673_v58 }
 0x57a   : > { %v1093_v30 = vmul.f32 %v2326_v19, %v2685_v61  ;;  %v2328_v58 = vpop.eup %2327  ;;  %v1087_v61 = vadd.f32 1e-06, %v1083_v14 }
 0x57b   : > { %v947_v39 = vsel %vm730_vm3, %v2328_v58, 0.0  ;;  %v2330_v40 = vpop.eup %2329 }
 0x57c   : > { %v1136_v31 = vpack.c.bf16 %v1093_v30, %v1092_v25  ;;  %v941_v41 = vsel %vm730_vm3, %v2330_v40, 0.0  ;;  %2337 = vrsqrt.f32 %v1087_v61  ;;  %v2332_v43 = vpop.eup %2331 }
 0x57d   : > { %v2334_v44 = vpop.eup %2333  ;;  %v1134_v45 = vmul.f32 %v2332_v43, %v2667_v56 }
 0x57e   : > { %v2336_v46 = vpop.eup %2335  ;;  %v1135_v47 = vmul.f32 %v2334_v44, %v2681_v60 }
 0x57f   : > { %v1094_v50 = vmul.f32 %v2336_v46, %v2667_v56 }
 0x580   : > { %v1139_v49 = vpack.c.bf16 %v1135_v47, %v1134_v45 }
 0x584   : > { %961 = vrot.lane.b32.xlu0 %v2792_v23, %s2463_s24 }
 0x588   : > { %1141 = vrot.lane.b32.xlu0 %v1136_v31, %s2462_s16 }
 0x589   : > { %v2338_v48 = vpop.eup %2337 }
 0x58a   : > { %v1095_v51 = vmul.f32 %v2338_v48, %v2681_v60 }
 0x58c   : > { %v1137_v52 = vpack.c.bf16 %v1095_v51, %v1094_v50 }
 0x599   : > { %948 = vadd.xlane.f32.xlu1 %v947_v39 }
 0x59d   : > { %942 = vadd.xlane.f32.xlu1 %v941_v41 }
 0x5ae   : > { %1197 = vrot.lane.b32.xlu1 %v1139_v49, %s2461_s9 }
 0x5b2   : > { %1194 = vrot.lane.b32.xlu1 %v1137_v52, %s2462_s16 }
 0x5e7   : > { %v1145_v57 = vpop.permute.xlu1 %1144 }
 0x5f3   : > { %v946_v53 = vpop.xlane.xlu0 %945 }
 0x5f4   : > { %2339 = vrcp.f32 %v946_v53 }
 0x5f7   : > { %v940_v54 = vpop.xlane.xlu0 %939 }
 0x5fb   : > { %v962_v55 = vpop.permute.xlu0 %961 }
 0x5fc   : > { %2131 = vmatpush3.bf16.msra.mxu1 %v962_v55 }
 0x5fd   : > { %2142 = vmatprep.subr.bf16.mxu1 %v2459_v28 }
 0x601   : > { %v2340_v56 = vpop.eup %2339 }
 0x602   : > { %v956_v60 = vmul.f32 %v2340_v56, %v2777_v2  ;;  %v1150_v2 = vsel %vm730_vm3, %v1145_v57, 0 }
 0x622   : > { %v949_v59 = vpop.xlane.xlu1 %948 }
 0x623   : > { %2341 = vrcp.f32 %v949_v59 }
 0x624   : > { %2343 = vrcp.f32 %v940_v54 }
 0x626   : > { %v943_v62 = vpop.xlane.xlu1 %942 }
 0x627   : > { %2345 = vrcp.f32 %v943_v62 }
 0x62a   : > { %v1198_v3 = vpop.permute.xlu1 %1197 }
 0x62b   : > { %v1203_v7 = vsel %vm730_vm3, %v1198_v3, 0 }
 0x62e   : > { %v1195_v11 = vpop.permute.xlu1 %1194 }
 0x630   : > { %v2342_v63 = vpop.eup %2341 }
 0x631   : > { %v957_v0 = vmul.f32 %v2342_v63, %v2328_v58  ;;  %v2344_v1 = vpop.eup %2343 }
 0x632   : > { %v954_v8 = vmul.f32 %v2344_v1, %v2781_v4  ;;  %v1142_v4 = vpop.permute.xlu0 %1141 }
 0x633   : > { %v959_v5 = vpack.c.bf16 %v957_v0, %v956_v60 }
 0x634   : > { %v2346_v6 = vpop.eup %2345 }
 0x635   : > { %2139 = vmatmul.mubr.msk.bf16.vlgmr.msra.gmra.mxu0 %vm730_vm3, %v959_v5  ;;  %v955_v9 = vmul.f32 %v2346_v6, %v2330_v40 }
 0x636   : > { %2149 = vmatpush3.bf16.xpose.msra.mxu0 %v1203_v7  ;;  %2150 = vmatprep.mubr.msk.bf16.mxu0 %vm2460_vm4, %v2459_v28 }
 0x637   : > { %v958_v10 = vpack.c.bf16 %v955_v9, %v954_v8  ;;  %2160 = vmatprep.subr.bf16.mxu0 %v2459_v28 }
 0x639   : > { %2133 = vmatmul.mubr.msk.bf16.vlgmr.msra.gmra.mxu1 %vm730_vm3, %v958_v10 }
 0x63a   : > { %2143 = vmatpush3.bf16.xpose.msra.mxu1 %v1150_v2  ;;  %2144 = vmatprep.mubr.msk.bf16.mxu1 %vm2460_vm4, %v2459_v28 }
 0x63b   : > { %2154 = vmatprep.subr.bf16.mxu1 %v2459_v28 }
 0x63d   : > { %2151 = vmatmul.mubr.msk.bf16.vlgmr.msra.gmra.mxu0 %vm730_vm3, %v1195_v11 }
 0x63e   : > { %2162 = vmatprep.mubr.msk.bf16.mxu0 %vm2460_vm4, %v2459_v28 }
 0x641   : > { %2145 = vmatmul.mubr.msk.bf16.vlgmr.msra.gmra.mxu1 %vm730_vm3, %v1142_v4 }
 0x642   : > { %2156 = vmatprep.mubr.msk.bf16.mxu1 %vm2460_vm4, %v2459_v28 }
 0x6f5   : > { %v2827_v12 = vpop.f32.mrf.mxu0 }
 0x6f7   : > { %v2140_v13 = vpop.f32.mrf.mxu0 }
 0x6f8   : > { %v2283_v13 = vld [vmem:[%s2585_s22 + $0x8] sm:$0xff]  }
 0x6f9   : > { %v2829_v15 = vpop.f32.mrf.mxu1  ;;  %v2831_v16 = vpop.f32.mrf.mxu0 }
 0x6fb   : > { %v2134_v17 = vpop.f32.mrf.mxu1  ;;  %v2141_v18 = vpop.f32.mrf.mxu0 }
 0x6fc   : > { %v2284_v18 = vld [vmem:[%s2585_s22] sm:$0xff]  }
 0x6fd   : > { %v2833_v19 = vpop.f32.mrf.mxu1  ;;  %v1239_v25 = vpop.f32.mrf.mxu0 }
 0x6fe   : > { %v1248_v28 = vmul.f32 0.25, %v1239_v25 }
 0x6ff   : > { %v2135_v27 = vpop.f32.mrf.mxu1  ;;  %v2152_v29 = vpop.f32.mrf.mxu0 }
 0x700   : > { %v1256_v38 = vsel %vm730_vm3, %v1248_v28, -inf }
 0x701   : > { %v1186_v30 = vpop.f32.mrf.mxu1  ;;  %v1242_v31 = vpop.f32.mrf.mxu0 }
 0x702   : > { %v1246_v32 = vmul.f32 0.25, %v1186_v30  ;;  %v1249_v37 = vmul.f32 0.25, %v1242_v31 }
 0x703   : > { %v2146_v24 = vpop.f32.mrf.mxu1  ;;  %v2153_v33 = vpop.f32.mrf.mxu0 }
 0x704   : > { %v1250_v34 = vsel %vm730_vm3, %v1246_v32, -inf  ;;  %v1259_v39 = vsel %vm730_vm3, %v1249_v37, -inf }
 0x705   : > { %1251 = vmax.xlane.f32.xlu0 %v1250_v34  ;;  %v1189_v35 = vpop.f32.mrf.mxu1 }
 0x706   : > { %v1247_v36 = vmul.f32 0.25, %v1189_v35 }
 0x707   : > { %v2147_v58 = vpop.f32.mrf.mxu1 }
 0x708   : > { %v1253_v14 = vsel %vm730_vm3, %v1247_v36, -inf }
 0x709   : > { %1254 = vmax.xlane.f32.xlu1 %v1253_v14  ;;  %1257 = vmax.xlane.f32.xlu0 %v1256_v38 }
 0x70d   : > { %1260 = vmax.xlane.f32.xlu0 %v1259_v39 }
 0x78e   : > { %v1252_v40 = vpop.xlane.xlu0 %1251 }
 0x78f   : > { %v1262_v61 = vsub.f32 %v1246_v32, %v1252_v40 }
 0x791   : > { %v1266_v45 = vmul.f32 1.442695, %v1262_v61 }
 0x792   : > { %v1258_v41 = vpop.xlane.xlu0 %1257  ;;  %v1255_v43 = vpop.xlane.xlu1 %1254 }
 0x793   : > { %v1264_v44 = vsub.f32 %v1248_v28, %v1258_v41  ;;  %v1263_v47 = vsub.f32 %v1247_v36, %v1255_v43 }
 0x795   : > { %v1270_v46 = vmul.f32 1.442695, %v1264_v44  ;;  %v1268_v50 = vmul.f32 1.442695, %v1263_v47 }
 0x796   : > { %v1261_v48 = vpop.xlane.xlu0 %1260 }
 0x797   : > { %2347 = vpow2.f32 %v1270_v46  ;;  %v1265_v49 = vsub.f32 %v1249_v37, %v1261_v48 }
 0x798   : > { %2349 = vpow2.f32 %v1266_v45 }
 0x799   : > { %v1272_v51 = vmul.f32 1.442695, %v1265_v49 }
 0x79b   : > { %2351 = vpow2.f32 %v1272_v51 }
 0x79c   : > { %2353 = vpow2.f32 %v1268_v50 }
 0x7a4   : > { %v2348_v52 = vpop.eup %2347 }
 0x7a5   : > { %v1280_v53 = vsel %vm730_vm3, %v2348_v52, 0.0  ;;  %v2350_v54 = vpop.eup %2349 }
 0x7a6   : > { %1281 = vadd.xlane.f32.xlu0 %v1280_v53  ;;  %v1274_v57 = vsel %vm730_vm3, %v2350_v54, 0.0 }
 0x7a8   : > { %v2352_v55 = vpop.eup %2351 }
 0x7a9   : > { %v1283_v59 = vsel %vm730_vm3, %v2352_v55, 0.0  ;;  %v2354_v62 = vpop.eup %2353 }
 0x7aa   : > { %1275 = vadd.xlane.f32.xlu0 %v1274_v57  ;;  %1284 = vadd.xlane.f32.xlu1 %v1283_v59  ;;  %v1277_v56 = vsel %vm730_vm3, %v2354_v62, 0.0  ;;  %v2285_v59 = vld [vmem:[%s2590_s25 + $0x8] sm:$0xff]  }
 0x7ae   : > { %1278 = vadd.xlane.f32.xlu1 %v1277_v56  ;;  %v2287_v56 = vld [vmem:[%s2596_s29 + $0x18] sm:$0xff]  }
 0x7bf   : > { %1343 = vrot.lane.b32.xlu1 %v2773_v42, %s2464_s26 }
 0x7c0   : > { %1296 = vrot.lane.b32.xlu0 %v2792_v23, %s2464_s26 }
 0x82f   : > { %v1282_v63 = vpop.xlane.xlu0 %1281 }
 0x830   : > { %2355 = vrcp.f32 %v1282_v63 }
 0x833   : > { %v1276_v60 = vpop.xlane.xlu0 %1275  ;;  %v1285_v0 = vpop.xlane.xlu1 %1284 }
 0x834   : > { %2357 = vrcp.f32 %v1285_v0 }
 0x835   : > { %2359 = vrcp.f32 %v1276_v60 }
 0x837   : > { %v1297_v1 = vpop.permute.xlu0 %1296  ;;  %v1279_v3 = vpop.xlane.xlu1 %1278 }
 0x838   : > { %2361 = vrcp.f32 %v1279_v3  ;;  %2155 = vmatpush3.bf16.msra.mxu1 %v1297_v1 }
 0x839   : > { %2166 = vmatprep.subr.bf16.mxu1 %v2283_v13 }
 0x83b   : > { %v1344_v5 = vpop.permute.xlu1 %1343 }
 0x83c   : > { %2161 = vmatpush3.bf16.msra.mxu0 %v1344_v5 }
 0x83d   : > { %v2356_v6 = vpop.eup %2355  ;;  %2174 = vmatprep.subr.bf16.mxu0 %v2285_v59 }
 0x83e   : > { %v1292_v42 = vmul.f32 %v2356_v6, %v2348_v52 }
 0x841   : > { %v2358_v7 = vpop.eup %2357 }
 0x842   : > { %v2360_v8 = vpop.eup %2359  ;;  %v1293_v9 = vmul.f32 %v2358_v7, %v2352_v55 }
 0x843   : > { %v1290_v2 = vmul.f32 %v2360_v8, %v2350_v54 }
 0x844   : > { %v1295_v10 = vpack.c.bf16 %v1293_v9, %v1292_v42 }
 0x845   : > { %v2362_v23 = vpop.eup %2361 }
 0x846   : > { %v1291_v11 = vmul.f32 %v2362_v23, %v2354_v62  ;;  %2163 = vmatmul.mubr.msk.bf16.vlgmr.msra.gmra.mxu0 %vm730_vm3, %v1295_v10  ;;  %v2286_v62 = vld [vmem:[%s2590_s25] sm:$0xff]  }
 0x847   : > { %2175 = vmatpush3.bf16.msra.mxu0 %v2285_v59 }
 0x848   : > { %v1294_v4 = vpack.c.bf16 %v1291_v11, %v1290_v2  ;;  %2176 = vmatprep.subr.bf16.mxu0 %v2286_v62 }
 0x84a   : > { %2157 = vmatmul.mubr.msk.bf16.vlgmr.msra.gmra.mxu1 %vm730_vm3, %v1294_v4 }
 0x84b   : > { %2167 = vmatpush3.bf16.msra.mxu1 %v2283_v13  ;;  %2177 = vmatpush3.bf16.msra.mxu0 %v2286_v62 }
 0x84c   : > { %2168 = vmatprep.subr.bf16.mxu1 %v2284_v18 }
 0x84f   : > { %2169 = vmatpush3.bf16.msra.mxu1 %v2284_v18 }
 0x850   : > { %2182 = vmatprep.subr.bf16.mxu1 %v2287_v56 }
 0x906   : > { %v1383_v17 = vpop.f32.mrf.mxu0 }
 0x908   : > { %v2164_v25 = vpop.f32.mrf.mxu0 }
 0x90a   : > { %v1336_v27 = vpop.f32.mrf.mxu1  ;;  %v1386_v29 = vpop.f32.mrf.mxu0 }
 0x90b   : > { %v2276_v28 = vpack.i.bf16 %v1386_v29, %v1383_v17 }
 0x90c   : > { %v2158_v30 = vpop.f32.mrf.mxu1  ;;  %v2165_v31 = vpop.f32.mrf.mxu0 }
 0x90d   : > { %v2288_v30 = vld [vmem:[%s2596_s29 + $0x10] sm:$0xff]   ;;  %v2289_v31 = vld [vmem:[%s2596_s29 + $0x8] sm:$0xff]  }
 0x90e   : > { %v1339_v32 = vpop.f32.mrf.mxu1 }
 0x90f   : > { %v2271_v24 = vpack.i.bf16 %v1339_v32, %v1336_v27  ;;  %v2290_v32 = vld [vmem:[%s2596_s29] sm:$0xff]  }
 0x910   : > { %v2159_v33 = vpop.f32.mrf.mxu1 }
 0x911   : > { %2272 = vrot.lane.b32.xlu1 %v2271_v24, %s2465_s30 }
 0x915   : > { %2277 = vrot.lane.b32.xlu1 %v2276_v28, %s2465_s30 }
 0x983   : > { %v2273_v34 = vpop.permute.xlu1 %2272 }
 0x984   : > { %v2275_v35 = vunpack.i.h.bf16 %v2273_v34  ;;  %v2274_v36 = vunpack.i.l.bf16 %v2273_v34 }
 0x986   : > { %v1407_v58 = vsel %vm730_vm3, %v2833_v19, %v2275_v35  ;;  %v1406_v37 = vsel %vm730_vm3, %v2829_v15, %v2274_v36  ;;  %v2021_v15 = vld [vmem:[%s477_s11] ss:$0 sm:$0xff] }
 0x987   : > { %v1410_v14 = vpack.c.bf16 %v1407_v58, %v1406_v37  ;;  %v2278_v38 = vpop.permute.xlu1 %2277 }
 0x988   : > { %v2280_v39 = vunpack.i.h.bf16 %v2278_v38  ;;  %v2279_v40 = vunpack.i.l.bf16 %v2278_v38 }
 0x989   : > { %2170 = vmatprep.mubr.msk.bf16.mxu1 %vm623_vm2, %v1410_v14 }
 0x98a   : > { %v1409_v61 = vsel %vm730_vm3, %v2831_v16, %v2280_v39  ;;  %v1408_v41 = vsel %vm730_vm3, %v2827_v12, %v2279_v40 }
 0x98b   : > { %v1411_v43 = vpack.c.bf16 %v1409_v61, %v1408_v41 }
 0x98d   : > { %2171 = vmatmul.mubr.msk.bf16.vlgmr.msra.gmra.mxu1 %vm623_vm2, %v1411_v43  ;;  %v2032_v43 = vld [vmem:[%s490_s18] ss:$0 sm:$0xff] }
 0x98e   : > { %2183 = vmatpush3.bf16.msra.mxu1 %v2287_v56 }
 0x98f   : > { %2184 = vmatprep.subr.bf16.mxu1 %v2288_v30 }
 0x992   : > { %2185 = vmatpush3.bf16.msra.mxu1 %v2288_v30 }
 0x993   : > { %2186 = vmatprep.subr.bf16.mxu1 %v2289_v31 }
 0x996   : > { %2187 = vmatpush3.bf16.msra.mxu1 %v2289_v31 }
 0x997   : > { %2188 = vmatprep.subr.bf16.mxu1 %v2290_v32 }
 0x99a   : > { %2189 = vmatpush3.bf16.msra.mxu1 %v2290_v32 }
 0xa4d   : > { %v2172_v19 = vpop.f32.mrf.mxu1 }
 0xa4e   : > { %v1492_v44 = vmul.f32 %v2172_v19, %v2021_v15 }
 0xa4f   : > { %v1468_v45 = vpop.f32.mrf.mxu1 }
 0xa50   : > { %v1490_v46 = vmul.f32 %v2021_v15, %v1468_v45  ;;  %v2865_v48 = vadd.f32 %v1492_v44, %v2639_v20 }
 0xa51   : > { %v2173_v47 = vpop.f32.mrf.mxu1 }
 0xa52   : > { %v2868_v16 = vadd.f32 %v1490_v46, %v2641_v21  ;;  %v1493_v12 = vmul.f32 %v2173_v47, %v2021_v15  ;;  %v1500_v21 = vmul.f32 %v2865_v48, %v2865_v48 }
 0xa53   : > { %v1471_v49 = vpop.f32.mrf.mxu1 }
 0xa54   : > { %v1491_v50 = vmul.f32 %v2021_v15, %v1471_v49  ;;  %v1498_v51 = vmul.f32 %v2868_v16, %v2868_v16  ;;  %v2873_v52 = vadd.f32 %v1493_v12, %v2643_v22  ;;  %v1508_v55 = vsel %vm623_vm2, %v1500_v21, 0.0 }
 0xa56   : > { %v2876_v53 = vadd.f32 %v1491_v50, %v2651_v26  ;;  %v1502_v20 = vsel %vm623_vm2, %v1498_v51, 0.0  ;;  %v1501_v22 = vmul.f32 %v2873_v52, %v2873_v52 }
 0xa57   : > { %1503 = vadd.xlane.f32.xlu0 %v1502_v20 }
 0xa58   : > { %v1499_v54 = vmul.f32 %v2876_v53, %v2876_v53  ;;  %v1511_v26 = vsel %vm623_vm2, %v1501_v22, 0.0 }
 0xa5a   : > { %v1505_v57 = vsel %vm623_vm2, %v1499_v54, 0.0 }
 0xa5b   : > { %1509 = vadd.xlane.f32.xlu0 %v1508_v55  ;;  %1506 = vadd.xlane.f32.xlu1 %v1505_v57 }
 0xa5f   : > { %1512 = vadd.xlane.f32.xlu0 %v1511_v26 }
 0xae0   : > { %v1504_v63 = vpop.xlane.xlu0 %1503 }
 0xae1   : > { %v1514_v60 = vmul.f32 0.03125, %v1504_v63 }
 0xae3   : > { %v1518_v0 = vadd.f32 1e-06, %v1514_v60 }
 0xae4   : > { %v1510_v1 = vpop.xlane.xlu0 %1509  ;;  %v1507_v3 = vpop.xlane.xlu1 %1506 }
 0xae5   : > { %v1516_v5 = vmul.f32 0.03125, %v1510_v1  ;;  %v1515_v6 = vmul.f32 0.03125, %v1507_v3  ;;  %2363 = vrsqrt.f32 %v1518_v0 }
 0xae7   : > { %v1520_v7 = vadd.f32 1e-06, %v1516_v5  ;;  %v1519_v8 = vadd.f32 1e-06, %v1515_v6 }
 0xae8   : > { %v1513_v42 = vpop.xlane.xlu0 %1512 }
 0xae9   : > { %v1517_v9 = vmul.f32 0.03125, %v1513_v42  ;;  %2365 = vrsqrt.f32 %v1519_v8 }
 0xaea   : > { %2367 = vrsqrt.f32 %v1520_v7 }
 0xaeb   : > { %v1521_v23 = vadd.f32 1e-06, %v1517_v9 }
 0xaed   : > { %2369 = vrsqrt.f32 %v1521_v23 }
 0xaf2   : > { %v2364_v10 = vpop.eup %2363 }
 0xaf3   : > { %v1526_v4 = vmul.f32 %v2364_v10, %v2868_v16 }
 0xaf6   : > { %v2366_v2 = vpop.eup %2365 }
 0xaf7   : > { %v2368_v11 = vpop.eup %2367  ;;  %v1527_v13 = vmul.f32 %v2366_v2, %v2876_v53 }
 0xaf8   : > { %v1528_v25 = vmul.f32 %v2368_v11, %v2865_v48 }
 0xaf9   : > { %v1530_v18 = vpack.c.bf16 %v1527_v13, %v1526_v4 }
 0xafa   : > { %v2370_v17 = vpop.eup %2369 }
 0xafb   : > { %v1529_v27 = vmul.f32 %v2370_v17, %v2873_v52  ;;  %2178 = vmatprep.mubr.msk.bf16.mxu0 %vm623_vm2, %v1530_v18 }
 0xafd   : > { %v1531_v29 = vpack.c.bf16 %v1529_v27, %v1528_v25 }
 0xaff   : > { %2179 = vmatmul.mubr.msk.bf16.vlgmr.msra.gmra.mxu0 %vm623_vm2, %v1531_v29 }
 0xbbf   : > { %v2180_v24 = vpop.f32.mrf.mxu0 }
 0xbc0   : > { %v1605_v36 = vmax.f32 %v2180_v24, 0.0 }
 0xbc1   : > { %v1588_v33 = vpop.f32.mrf.mxu0 }
 0xbc2   : > { %v1603_v34 = vmax.f32 %v1588_v33, 0.0  ;;  %v1609_v40 = vmul.f32 %v1605_v36, %v1605_v36 }
 0xbc3   : > { %v2181_v28 = vpop.f32.mrf.mxu0 }
 0xbc4   : > { %v1606_v35 = vmax.f32 %v2181_v28, 0.0  ;;  %v1607_v38 = vmul.f32 %v1603_v34, %v1603_v34 }
 0xbc5   : > { %v1591_v58 = vpop.f32.mrf.mxu0 }
 0xbc6   : > { %v1604_v37 = vmax.f32 %v1591_v58, 0.0  ;;  %v1610_v14 = vmul.f32 %v1606_v35, %v1606_v35 }
 0xbc8   : > { %v1608_v39 = vmul.f32 %v1604_v37, %v1604_v37  ;;  %v1612_v41 = vpack.c.bf16 %v1610_v14, %v1609_v40 }
 0xbca   : > { %v1611_v61 = vpack.c.bf16 %v1608_v39, %v1607_v38 }
 0xbcc   : > { %2190 = vmatprep.mubr.msk.bf16.mxu1 %vm1645_vm5, %v1611_v61 }
 0xbcd   : > { %2191 = vmatmul.mubr.msk.bf16.vlgmr.msra.gmra.mxu1 %vm1645_vm5, %v1612_v41 }
 0xc8d   : > { %v2192_v15 = vpop.f32.mrf.mxu1 }
 0xc8e   : > { %v1710_v19 = vmul.f32 %v2192_v15, %v2032_v43 }
 0xc8f   : > { %v1686_v44 = vpop.f32.mrf.mxu1 }
 0xc90   : > { %v1714_v45 = vadd.f32 %v1710_v19, %v2865_v48  ;;  %v1708_v46 = vmul.f32 %v2032_v43, %v1686_v44 }
 0xc91   : > { %v2193_v47 = vpop.f32.mrf.mxu1 }
 0xc92   : > { %1718 = vst.msk [vmem:[#allocation2 + $0x10] sm:$0xff] %vm623_vm2, %v1714_v45  ;;  %v1712_v12 = vadd.f32 %v1708_v46, %v2868_v16  ;;  %v1711_v49 = vmul.f32 %v2193_v47, %v2032_v43 }
 0xc93   : > { %v1689_v50 = vpop.f32.mrf.mxu1 }
 0xc94   : > { %1716 = vst.msk [vmem:[#allocation2] sm:$0xff] %vm623_vm2, %v1712_v12  ;;  %v1715_v51 = vadd.f32 %v1711_v49, %v2873_v52  ;;  %v1709_v20 = vmul.f32 %v2032_v43, %v1689_v50  ;;  %1723 = sbr.rel (%p2033_p3) target bundleno = 3604 (0xe14), region = 72 }
 0xc96   : > { %1719 = vst.msk [vmem:[#allocation2 + $0x18] sm:$0xff] %vm623_vm2, %v1715_v51  ;;  %v1713_v21 = vadd.f32 %v1709_v20, %v2876_v53 }
 0xc98   : > { %1717 = vst.msk [vmem:[#allocation2 + $0x8] sm:$0xff] %vm623_vm2, %v1713_v21 }
 0xc99   : > { %v1724_v48 = vsel %vm623_vm2, %v1712_v12, 0.0  ;;  %v1725_v16 = vsel %vm623_vm2, %v1713_v21, 0.0  ;;  %v1733_v54 = vsel %vm623_vm2, %v1714_v45, 0.0  ;;  %v1734_v55 = vsel %vm623_vm2, %v1715_v51, 0.0  ;;  %v1767_v10 = vld [vmem:[#allocation3 + $0x18] sm:$0xff]  ;;  %v1766_v11 = vld [vmem:[#allocation3 + $0x10] sm:$0xff] }
 0xc9a   : > { %v1726_v57 = vadd.f32 %v1725_v16, %v1724_v48  ;;  %v1735_v52 = vadd.f32 %v1734_v55, %v1733_v54  ;;  %vm1748_vm6 = vcmask 1041409   ;;  %vm1751_vm7 = vcmask 254976   ;;  %v1765_v4 = vld [vmem:[#allocation3 + $0x8] sm:$0xff]  ;;  %v1764_v13 = vld [vmem:[#allocation3] sm:$0xff] }
 0xc9b   : > { %v2466_v2 = vmov 0.0   ;;  %vm2467_vm8 = vmmov 0  }
 0xc9c   : > { %v1727_v22 = vrot.slane %v1726_v57, 4  ;;  %v1736_v26 = vrot.slane %v1735_v52, 4  ;;  %2194 = vmatprep.subr.mxu0 %v2466_v2  ;;  %2202 = vmatprep.mubr.msk.f32.mxu0 %vm2467_vm8, %v2466_v2 }
 0xc9d   : > { %2195 = vmatpush3.msra.mxu0 %v1767_v10 }
 0xc9e   : > { %v1728_v59 = vadd.f32 %v1727_v22, %v1726_v57  ;;  %v1737_v62 = vadd.f32 %v1736_v26, %v1735_v52  ;;  %2196 = vmatprep.subr.mxu0 %v2466_v2 }
 0xc9f   : > { %2197 = vmatpush3.msra.mxu0 %v1766_v11 }
 0xca0   : > { %v1729_v53 = vrot.slane %v1728_v59, 2  ;;  %v1738_v56 = vrot.slane %v1737_v62, 2  ;;  %2198 = vmatprep.subr.mxu0 %v2466_v2 }
 0xca1   : > { %2199 = vmatpush3.msra.mxu0 %v1765_v4 }
 0xca2   : > { %v1730_v63 = vadd.f32 %v1729_v53, %v1728_v59  ;;  %v1739_v60 = vadd.f32 %v1738_v56, %v1737_v62  ;;  %2200 = vmatprep.subr.mxu0 %v2466_v2 }
 0xca3   : > { %2201 = vmatpush3.msra.mxu0 %v1764_v13 }
 0xca4   : > { %v1731_v0 = vrot.slane %v1730_v63, 1  ;;  %v1740_v1 = vrot.slane %v1739_v60, 1 }
 0xca6   : > { %v1732_v3 = vadd.f32 %v1731_v0, %v1730_v63  ;;  %v1741_v5 = vadd.f32 %v1740_v1, %v1739_v60 }
 0xca8   : > { %v1742_v6 = vmul.f32 0.0625, %v1732_v3  ;;  %v1743_v7 = vmul.f32 0.0625, %v1741_v5 }
 0xcaa   : > { %v1744_v8 = vmul.f32 %v1742_v6, %v1742_v6  ;;  %v1745_v42 = vmul.f32 %v1743_v7, %v1743_v7 }
 0xcac   : > { %v1749_v9 = vsel %vm1748_vm6, %v1745_v42, %v1744_v8 }
 0xcad   : > { %v1752_v23 = vsel %vm1751_vm7, %v1749_v9, 0.0 }
 0xcae   : > { %1753 = vadd.xlane.f32.xlu0 %v1752_v23 }
 0xd37   : > { %v1754_v17 = vpop.xlane.xlu0 %1753 }
 0xd38   : > { %v1755_v18 = vmul.f32 0.03125, %v1754_v17 }
 0xd3a   : > { %v1756_v25 = vadd.f32 1e-06, %v1755_v18 }
 0xd3c   : > { %2371 = vrsqrt.f32 %v1756_v25 }
 0xd49   : > { %v2372_v27 = vpop.eup %2371 }
 0xd4a   : > { %v1759_v29 = vrot.slane %v2372_v27, 1  ;;  %v1762_v31 = vmul.f32 %v2372_v27, %v1742_v6 }
 0xd4c   : > { %v1763_v30 = vmul.f32 %v1759_v29, %v1743_v7 }
 0xd4e   : > { %v1770_v32 = vrot.slane %v1763_v30, 7 }
 0xd50   : > { %v1771_v24 = vsel %vm1748_vm6, %v1770_v32, %v1762_v31 }
 0xd51   : > { %2203 = vmatmul.mubr.msk.f32.vlgmr.msra.gmra.mxu0 %vm623_vm2, %v1771_v24 }
 0xe11   : > { %v1840_v33 = vpop.f32.mrf.mxu0 }
 0xe12   : > { %1844 = vst [vmem:[#allocation6] sm:$0x3] %v1840_v33 }
 0xe13   : > { %v2204_v28 = vpop.f32.mrf.mxu0 }
 0xe14 PF: > { %s2963_s13 = sadd.s32 4294967295, %s2453_s15   ;;  %s2468_s29 = smov [#allocation6]  }
 0xe15   : > { %p2923_p4 = scmp.eq.s32.totalorder %s2963_s13, 1  ;;  %s1854_s18 = sshll.u32 %s2468_s29, 4  ;;  %s1855_s18 = int_to_ptr.vmem [resolvable:$true] %s1854_s18 }
 0xe16   : > { %s2399_s19 = scalar_lea.vmem %s1855_s18, 32  ;;  %p2406_p8 = scmp.lt.s32.totalorder %s1855_s18, %s1855_s18 }
 0xe17   : > { %p2400_p5 = scmp.ne.s32.totalorder %s1855_s18, %s2399_s19  ;;  %p2407_p9 = scmp.lt.s32.totalorder %s2399_s19, %s2399_s19 }
 0xe19   : > { %p2401_p6 = pnand %p2400_p5, %p2923_p4  ;;  %p2408_p10 = por %p2407_p9, %p2406_p8 }
 0xe1b   : > { %p2402_p7 = pneg %p2401_p6 }
 0xe1d   : > { %p2409_p11 = pnand %p2408_p10, %p2402_p7 }
 0xe1f   : > { %2412 = shalt.err (!%p2409_p11)
}
 0xe20   : > { %2222 = dma.vmem_to_hbm [thread:$0]  (%p2923_p4), %s1855_s18, 32, %s2957_s10, [#allocation5]  }
 0xe21   : > { %2440 = dma.done.wait (%p2923_p4), [#allocation5], 32  }
 0xe22   : > { %2442 = vsyncadd (%p2923_p4), [#allocation5], 4294967264 }
 0xe23 PF: > { %s22_s15 = sadd.s32 1, %s2453_s15   ;;  %s2965_s13 = smov %s2449_s14 }
 0xe24   : > { %p19_p12 = scmp.ge.s32.totalorder %s22_s15, 4   ;;  %s2966_s14 = smov %s2968_s17 }
 0xe26   :  { %21 = sbr.rel (!%p19_p12) target bundleno = 5 (0x5), region = 119 }
 0xe2b   :  { %1867 = vsyncpa [#allocation4], 1 }
 0xe2c   :  { %1869 = vsyncpa [#allocation4 + $0x1], 1 }
 0xe2d   :  { %1870 = vsyncpa [#allocation5], 1 }
 0xe2e   :  { %1872 = vsyncpa [#allocation5 + $0x1], 1 }

</bundles_post_ra>
